<compile_context>
chip_gen: v5e
topology: v5e:2x2
jax: 0.10.0
libtpu: 0.0.40
codegen_flags: <defaults>
</compile_context>

<pallas_src>
import functools

import jax
import jax.numpy as jnp
from jax.experimental import pallas as pl
from jax.experimental.pallas import tpu as pltpu

LANE = 128
SUBLANE = 8
LEAKY_SLOPE = 0.01            # nn.LeakyReLU() default negative_slope
PARAM_DTYPE = jnp.bfloat16    # weight storage / MXU input dtype (f32 accumulate)


def _round_up(x, m):
    return (x + m - 1) // m * m


# ----------------------------------------------------------------------------
# Fused kernel factory.  Static metadata (layer -> slab/row/bias offsets and all
# padded dims) is closed over, so the kernel body is fully unrolled & static.
# ----------------------------------------------------------------------------
def _make_fused_kernel(layer_meta, n_slabs, b_pad, n_pad, k_pad):
    n_layers = len(layer_meta)

    def kernel(in_ref, const_ref, bias_ref, wk_ref, *rest):
        wslab_refs = rest[:n_slabs]
        out_ref = rest[n_slabs]

        # ---- base MLP: 12 x (Linear + Tanh) + (folded Linear + LeakyReLU).
        # Padded weight rows/cols & bias cols are zero, so padded activation
        # columns stay exactly zero through tanh / LeakyReLU.
        h = in_ref[:, :LANE]                               # (n_pad, 128) f32
        for i, (slab, roff, in_pad, out_pad, boff) in enumerate(layer_meta):
            hb = h.astype(PARAM_DTYPE)
            wref = wslab_refs[slab]
            z = None
            # Chunked-K accumulation: keeps live weight tiles <= (128, out_pad)
            # so the 256/512-wide middle layers don't blow the vreg file.
            for c in range(in_pad // LANE):
                part = jnp.dot(hb[:, c * LANE:(c + 1) * LANE],
                               wref[roff + c * LANE: roff + (c + 1) * LANE, :],
                               preferred_element_type=jnp.float32)
                z = part if z is None else z + part
            z = z + bias_ref[0:1, boff:boff + out_pad]
            if i < n_layers - 1:
                h = jnp.tanh(z)
            else:
                h = jnp.maximum(z, LEAKY_SLOPE * z)        # LeakyReLU(0.01)

        # ---- (B*T, P) phi -> (B, T*P) phi placed at z_in columns [td, td+tp):
        # the folded last layer already tiled phi across the whole band, the
        # mask keeps each row's own time-step block (and kills padded garbage
        # rows), and one tiny exact (fp32-precision) selection matmul sums each
        # batch's T rows into one output row.
        msk = const_ref[:, :k_pad]                         # (n_pad, k_pad)
        sel = const_ref[:b_pad, k_pad:k_pad + n_pad]       # (b_pad, n_pad)
        phi_exp = h * msk
        r_phi = jnp.dot(sel, phi_exp,
                        preferred_element_type=jnp.float32,
                        precision=jax.lax.Precision.HIGHEST)   # exact pass-through

        # ---- z_in = [rs | r_phi | u | 0] with a single add (no lane concats).
        # It IS phi_current (wrapper slices off the u/pad columns) and it IS the
        # Koopman matmul input.
        z_in = in_ref[:b_pad, LANE:LANE + k_pad] + r_phi   # (b_pad, k_pad)
        out_ref[:, :k_pad] = z_in

        # ---- Koopman step: ONE matmul against the stacked, padded [A; B].
        out_ref[:, k_pad:] = jnp.dot(z_in.astype(PARAM_DTYPE), wk_ref[...],
                                     preferred_element_type=jnp.float32)

    return kernel


# ----------------------------------------------------------------------------
# Parameter construction (deterministic, synthetic).
# ----------------------------------------------------------------------------
def init_params(key, state_size, hidden_size, output_size, control_size, time_step):
    h = hidden_size
    dims = [state_size,
            h, h * 2, h * 4, h * 8, h * 16, h * 32, h * 64,
            h * 32, h * 16, h * 8, h * 4, h * 2,
            output_size]

    weights, biases = [], []
    for i in range(len(dims) - 1):
        key, kw, kb = jax.random.split(key, 3)
        fan_in, fan_out = dims[i], dims[i + 1]
        scale = 1.0 / jnp.sqrt(jnp.float32(fan_in))
        weights.append(jax.random.uniform(kw, (fan_in, fan_out), jnp.float32,
                                          minval=-scale, maxval=scale))
        biases.append(jax.random.uniform(kb, (fan_out,), jnp.float32,
                                         minval=-scale, maxval=scale))

    concat_feat = state_size * time_step + output_size * time_step
    add_feat = time_step * state_size + output_size * time_step
    key, ka, kb2 = jax.random.split(key, 3)
    a_w = jax.random.uniform(ka, (concat_feat, add_feat), jnp.float32,
                             minval=-1.0 / jnp.sqrt(jnp.float32(concat_feat)),
                             maxval=1.0 / jnp.sqrt(jnp.float32(concat_feat)))
    b_w = jax.random.uniform(kb2, (control_size, add_feat), jnp.float32,
                             minval=-1.0 / jnp.sqrt(jnp.float32(control_size)),
                             maxval=1.0 / jnp.sqrt(jnp.float32(control_size)))
    return weights, biases, a_w, b_w


# ----------------------------------------------------------------------------
# Parameter packing: folded last layer, bf16 weight slabs grouped by padded
# output width, f32 bias slab, stacked Koopman weight, merged mask/selmat slab.
# ----------------------------------------------------------------------------
def pack_params(weights, biases, a_w, b_w, batch, time_step, state_size,
                output_size, control_size):
    td = time_step * state_size
    tp = time_step * output_size
    concat_feat = td + tp
    add_feat = a_w.shape[1]
    k_true = concat_feat + control_size
    k_pad = max(LANE, _round_up(k_true, LANE))
    f_pad = max(LANE, _round_up(add_feat, LANE))
    assert state_size <= LANE  # TODO(synk): tile the MLP input if state_size > 128

    # --- fold the time-step tiling into the LAST layer: replicate W13/b13 into
    # the z_in column band [td + t*P, td + (t+1)*P) for every t.
    w_last, b_last = weights[-1], biases[-1]
    w_fold = jnp.zeros((w_last.shape[0], k_pad), jnp.float32)
    b_fold = jnp.zeros((k_pad,), jnp.float32)
    for t in range(time_step):
        off = td + t * output_size
        w_fold = w_fold.at[:, off:off + output_size].set(w_last)
        b_fold = b_fold.at[off:off + output_size].set(b_last)
    weights = list(weights[:-1]) + [w_fold]
    biases = list(biases[:-1]) + [b_fold]

    # --- group layer weights into bf16 slabs by padded output width.
    in_pads = [max(LANE, _round_up(w.shape[0], LANE)) for w in weights]
    out_pads = [max(LANE, _round_up(w.shape[1], LANE)) for w in weights]
    widths = sorted(set(out_pads))
    row_cursor = {wl: 0 for wl in widths}
    padded_by_width = {wl: [] for wl in widths}
    meta = []
    bias_off = 0
    for i, w in enumerate(weights):
        wl = out_pads[i]
        meta.append((widths.index(wl), row_cursor[wl], in_pads[i], wl, bias_off))
        row_cursor[wl] += in_pads[i]
        bias_off += wl
        padded_by_width[wl].append(
            jnp.pad(w, ((0, in_pads[i] - w.shape[0]), (0, wl - w.shape[1]))))
    wslabs = tuple(jnp.concatenate(padded_by_width[wl], axis=0).astype(PARAM_DTYPE)
                   for wl in widths)

    bias_slab = jnp.concatenate(
        [jnp.pad(b.reshape(1, -1), ((0, 0), (0, out_pads[i] - b.size)))
         for i, b in enumerate(biases)], axis=1).astype(jnp.float32)

    # --- stacked Koopman weight [A; B], zero padded to (k_pad, f_pad), bf16.
    wk = jnp.zeros((k_pad, f_pad), jnp.float32)
    wk = wk.at[:concat_feat, :add_feat].set(a_w)
    wk = wk.at[concat_feat:concat_feat + control_size, :add_feat].set(b_w)
    wk = wk.astype(PARAM_DTYPE)

    # --- merged constant slab: [ mask (n_pad, k_pad) | selmat (b_pad, n_pad) ].
    # Both carry the (row < n_rows) terms that kill padded garbage rows -- these
    # are load-bearing and must be preserved.
    b_pad = _round_up(batch, SUBLANE)
    n_rows = batch * time_step
    n_pad = _round_up(n_rows, SUBLANE)
    rr = jnp.arange(n_pad)[:, None]
    jj = jnp.arange(k_pad)[None, :]
    in_band = (jj >= td) & (jj < td + tp)
    mask = (in_band & ((jj - td) // output_size == rr % time_step)
            & (rr < n_rows)).astype(jnp.float32)
    bb = jnp.arange(b_pad)[:, None]
    rr2 = jnp.arange(n_pad)[None, :]
    selmat = ((rr2 // time_step == bb) & (rr2 < n_rows)
              & (bb < batch)).astype(jnp.float32)
    const = jnp.zeros((n_pad, k_pad + n_pad), jnp.float32)
    const = const.at[:, :k_pad].set(mask)
    const = const.at[:b_pad, k_pad:].set(selmat)

    packed = dict(wslabs=wslabs, bias=bias_slab, wk=wk, const=const)
    static = dict(meta=tuple(meta), b_pad=b_pad, n_pad=n_pad, k_pad=k_pad,
                  f_pad=f_pad, td=td, tp=tp, concat_feat=concat_feat,
                  add_feat=add_feat)
    return packed, static


# ----------------------------------------------------------------------------
# Forward pass wrapper (lightweight padding + one pallas_call + unpadding).
# ----------------------------------------------------------------------------
def lko_mlp_forward(state_input, control_input, packed, static,
                    time_step, state_size, output_size, control_size):
    batch = state_input.shape[0]
    n_rows = batch * time_step
    b_pad, n_pad = static["b_pad"], static["n_pad"]
    td, tp = static["td"], static["tp"]
    k_pad, f_pad = static["k_pad"], static["f_pad"]

    # One f32 input slab (n_pad, 128 + k_pad):
    #   cols [0, 128)           : flattened (B*T, D) state rows -> MLP input
    #   cols [128, 128 + k_pad) : z_in skeleton [rs | 0 | u | 0] per batch row
    x_slab = jnp.pad(state_input.reshape(n_rows, state_size),
                     ((0, n_pad - n_rows), (0, LANE - state_size)))
    rsu = jnp.concatenate(
        [state_input.reshape(batch, td),
         jnp.zeros((batch, tp), jnp.float32), control_input], axis=1)
    rsu_slab = jnp.pad(rsu, ((0, n_pad - batch),
                             (0, k_pad - (td + tp + control_size))))
    in_slab = jnp.concatenate([x_slab, rsu_slab], axis=1)

    n_slabs = len(packed["wslabs"])
    kernel = _make_fused_kernel(static["meta"], n_slabs, b_pad, n_pad, k_pad)

    inputs = (in_slab, packed["const"], packed["bias"], packed["wk"]) + packed["wslabs"]

    flops = 2 * n_pad * sum(ip * op for (_, _, ip, op, _) in static["meta"])
    flops += 2 * b_pad * n_pad * k_pad            # selection matmul
    flops += 2 * b_pad * k_pad * f_pad            # Koopman matmul
    transcend = n_pad * sum(op for (_, _, _, op, _) in static["meta"][:-1])
    in_bytes = sum(int(a.size) * a.dtype.itemsize for a in inputs)
    out_bytes = b_pad * (k_pad + f_pad) * 4
    cost = pl.CostEstimate(flops=int(flops), transcendentals=int(transcend),
                           bytes_accessed=int(in_bytes + out_bytes))

    vmem = pl.BlockSpec(memory_space=pltpu.MemorySpace.VMEM)
    out = pl.pallas_call(
        kernel,
        out_shape=jax.ShapeDtypeStruct((b_pad, k_pad + f_pad), jnp.float32),
        in_specs=[vmem] * len(inputs),
        out_specs=vmem,
        cost_estimate=cost,
    )(*inputs)

    phi_current = out[:batch, :static["concat_feat"]]
    phi_pred = out[:batch, k_pad:k_pad + static["add_feat"]]
    return phi_current, phi_pred


# ----------------------------------------------------------------------------
# Pure-JAX reference with the SAME bf16-weight / f32-accumulate numerics.
# ----------------------------------------------------------------------------
def reference_forward(state_input, control_input, weights, biases, a_w, b_w):
    batch, time_step, _ = state_input.shape
    n_layers = len(weights)
    h = state_input.reshape(batch * time_step, -1)
    for i, (w, b) in enumerate(zip(weights, biases)):
        z = jnp.dot(h.astype(PARAM_DTYPE), w.astype(PARAM_DTYPE),
                    preferred_element_type=jnp.float32) + b.reshape(1, -1)
        if i < n_layers - 1:
            h = jnp.tanh(z)
        else:
            h = jnp.where(z > 0, z, LEAKY_SLOPE * z)
    phi_seq = h.reshape(batch, time_step, -1)
    phi_current = jnp.concatenate(
        [state_input.reshape(batch, -1), phi_seq.reshape(batch, -1)], axis=1)
    z_in = jnp.concatenate([phi_current, control_input], axis=1)
    wk = jnp.concatenate([a_w, b_w], axis=0)
    phi_pred = jnp.dot(z_in.astype(PARAM_DTYPE), wk.astype(PARAM_DTYPE),
                       preferred_element_type=jnp.float32)
    return phi_current, phi_pred


if __name__ == "__main__":
    batch = 2
    time_step = 5
    state_size = 4
    hidden_size = 8       # deepest layer width = hidden_size * 64 = 512
    output_size = 16
    control_size = 3

    key = jax.random.PRNGKey(0)
    key, k_state, k_ctrl, k_params = jax.random.split(key, 4)
    state_input = jax.random.normal(k_state, (batch, time_step, state_size), jnp.float32)
    control_input = jax.random.normal(k_ctrl, (batch, control_size), jnp.float32)

    weights, biases, a_w, b_w = init_params(
        k_params, state_size, hidden_size, output_size, control_size, time_step)
    packed, static = pack_params(weights, biases, a_w, b_w, batch, time_step,
                                 state_size, output_size, control_size)

    fwd = jax.jit(functools.partial(
        lko_mlp_forward, packed=packed, static=static, time_step=time_step,
        state_size=state_size, output_size=output_size, control_size=control_size))

    phi_current, phi_pred = fwd(state_input, control_input)
    jax.block_until_ready((phi_current, phi_pred))

    ref_current, ref_pred = reference_forward(
        state_input, control_input, weights, biases, a_w, b_w)

    assert phi_current.shape == (batch, time_step * (state_size + output_size))
    assert phi_pred.shape == (batch, time_step * state_size + time_step * output_size)
    # The raw-state slab of phi_current is a pure f32 copy -> exact.
    assert jnp.allclose(phi_current[:, :time_step * state_size],
                        state_input.reshape(batch, -1), atol=0.0, rtol=0.0)
    # bf16 weights + f32 accumulation (review-sanctioned); the phi slab is now an
    # exact pass-through (precision=HIGHEST selection), remaining diffs come only
    # from bf16-weight matmul accumulation-order differences vs. XLA.
    assert jnp.allclose(phi_current, ref_current, atol=1e-2, rtol=1e-2)
    assert jnp.allclose(phi_pred, ref_pred, atol=1e-2, rtol=1e-2)

    print("KERNEL_OK")
</pallas_src>

<mosaic_0001>
module attributes {stable_mosaic.version = 11 : i64} {
  func.func @kernel(%arg0: memref<16x256xf32, #tpu.memory_space<vmem>>, %arg1: memref<16x144xf32, #tpu.memory_space<vmem>>, %arg2: memref<1x2304xf32, #tpu.memory_space<vmem>>, %arg3: memref<128x128xbf16, #tpu.memory_space<vmem>>, %arg4: memref<1408x128xbf16, #tpu.memory_space<vmem>>, %arg5: memref<640x256xbf16, #tpu.memory_space<vmem>>, %arg6: memref<256x512xbf16, #tpu.memory_space<vmem>>, %arg7: memref<8x256xf32, #tpu.memory_space<vmem>>) attributes {dimension_semantics = [], scalar_prefetch = 0 : i64, scratch_operands = 0 : i64, tpu.core_type = #tpu.core_type<tc>} {
    %c0 = arith.constant 0 : index
    %c0_0 = arith.constant 0 : index
    %0 = vector.load %arg0[%c0, %c0_0] : memref<16x256xf32, #tpu.memory_space<vmem>>, vector<16x128xf32>
    %1 = arith.truncf %0 : vector<16x128xf32> to vector<16x128xbf16>
    %c0_1 = arith.constant 0 : index
    %c0_2 = arith.constant 0 : index
    %2 = vector.load %arg4[%c0_1, %c0_2] : memref<1408x128xbf16, #tpu.memory_space<vmem>>, vector<128x128xbf16>
    %cst = arith.constant dense<0.000000e+00> : vector<16x128xf32>
    %3 = tpu.matmul %1, %2, %cst {dimension_numbers = #tpu.dot_dimension_numbers<[1], [0], [0], [1], [0, 0, 1, 1], [], []>} : vector<16x128xbf16>, vector<128x128xbf16>, vector<16x128xf32> -> vector<16x128xf32>
    %c0_3 = arith.constant 0 : index
    %c0_4 = arith.constant 0 : index
    %4 = vector.load %arg2[%c0_3, %c0_4] : memref<1x2304xf32, #tpu.memory_space<vmem>>, vector<1x128xf32>
    %5 = vector.broadcast %4 : vector<1x128xf32> to vector<16x128xf32>
    %6 = arith.addf %3, %5 : vector<16x128xf32>
    %7 = math.tanh %6 : vector<16x128xf32>
    %8 = arith.truncf %7 : vector<16x128xf32> to vector<16x128xbf16>
    %c128 = arith.constant 128 : index
    %c0_5 = arith.constant 0 : index
    %9 = vector.load %arg4[%c128, %c0_5] : memref<1408x128xbf16, #tpu.memory_space<vmem>>, vector<128x128xbf16>
    %cst_6 = arith.constant dense<0.000000e+00> : vector<16x128xf32>
    %10 = tpu.matmul %8, %9, %cst_6 {dimension_numbers = #tpu.dot_dimension_numbers<[1], [0], [0], [1], [0, 0, 1, 1], [], []>} : vector<16x128xbf16>, vector<128x128xbf16>, vector<16x128xf32> -> vector<16x128xf32>
    %c0_7 = arith.constant 0 : index
    %c128_8 = arith.constant 128 : index
    %11 = vector.load %arg2[%c0_7, %c128_8] : memref<1x2304xf32, #tpu.memory_space<vmem>>, vector<1x128xf32>
    %12 = vector.broadcast %11 : vector<1x128xf32> to vector<16x128xf32>
    %13 = arith.addf %10, %12 : vector<16x128xf32>
    %14 = math.tanh %13 : vector<16x128xf32>
    %15 = arith.truncf %14 : vector<16x128xf32> to vector<16x128xbf16>
    %c256 = arith.constant 256 : index
    %c0_9 = arith.constant 0 : index
    %16 = vector.load %arg4[%c256, %c0_9] : memref<1408x128xbf16, #tpu.memory_space<vmem>>, vector<128x128xbf16>
    %cst_10 = arith.constant dense<0.000000e+00> : vector<16x128xf32>
    %17 = tpu.matmul %15, %16, %cst_10 {dimension_numbers = #tpu.dot_dimension_numbers<[1], [0], [0], [1], [0, 0, 1, 1], [], []>} : vector<16x128xbf16>, vector<128x128xbf16>, vector<16x128xf32> -> vector<16x128xf32>
    %c0_11 = arith.constant 0 : index
    %c256_12 = arith.constant 256 : index
    %18 = vector.load %arg2[%c0_11, %c256_12] : memref<1x2304xf32, #tpu.memory_space<vmem>>, vector<1x128xf32>
    %19 = vector.broadcast %18 : vector<1x128xf32> to vector<16x128xf32>
    %20 = arith.addf %17, %19 : vector<16x128xf32>
    %21 = math.tanh %20 : vector<16x128xf32>
    %22 = arith.truncf %21 : vector<16x128xf32> to vector<16x128xbf16>
    %c384 = arith.constant 384 : index
    %c0_13 = arith.constant 0 : index
    %23 = vector.load %arg4[%c384, %c0_13] : memref<1408x128xbf16, #tpu.memory_space<vmem>>, vector<128x128xbf16>
    %cst_14 = arith.constant dense<0.000000e+00> : vector<16x128xf32>
    %24 = tpu.matmul %22, %23, %cst_14 {dimension_numbers = #tpu.dot_dimension_numbers<[1], [0], [0], [1], [0, 0, 1, 1], [], []>} : vector<16x128xbf16>, vector<128x128xbf16>, vector<16x128xf32> -> vector<16x128xf32>
    %c0_15 = arith.constant 0 : index
    %c384_16 = arith.constant 384 : index
    %25 = vector.load %arg2[%c0_15, %c384_16] : memref<1x2304xf32, #tpu.memory_space<vmem>>, vector<1x128xf32>
    %26 = vector.broadcast %25 : vector<1x128xf32> to vector<16x128xf32>
    %27 = arith.addf %24, %26 : vector<16x128xf32>
    %28 = math.tanh %27 : vector<16x128xf32>
    %29 = arith.truncf %28 : vector<16x128xf32> to vector<16x128xbf16>
    %c512 = arith.constant 512 : index
    %c0_17 = arith.constant 0 : index
    %30 = vector.load %arg4[%c512, %c0_17] : memref<1408x128xbf16, #tpu.memory_space<vmem>>, vector<128x128xbf16>
    %cst_18 = arith.constant dense<0.000000e+00> : vector<16x128xf32>
    %31 = tpu.matmul %29, %30, %cst_18 {dimension_numbers = #tpu.dot_dimension_numbers<[1], [0], [0], [1], [0, 0, 1, 1], [], []>} : vector<16x128xbf16>, vector<128x128xbf16>, vector<16x128xf32> -> vector<16x128xf32>
    %c0_19 = arith.constant 0 : index
    %c512_20 = arith.constant 512 : index
    %32 = vector.load %arg2[%c0_19, %c512_20] : memref<1x2304xf32, #tpu.memory_space<vmem>>, vector<1x128xf32>
    %33 = vector.broadcast %32 : vector<1x128xf32> to vector<16x128xf32>
    %34 = arith.addf %31, %33 : vector<16x128xf32>
    %35 = math.tanh %34 : vector<16x128xf32>
    %36 = arith.truncf %35 : vector<16x128xf32> to vector<16x128xbf16>
    %c0_21 = arith.constant 0 : index
    %c0_22 = arith.constant 0 : index
    %37 = vector.load %arg5[%c0_21, %c0_22] : memref<640x256xbf16, #tpu.memory_space<vmem>>, vector<128x256xbf16>
    %cst_23 = arith.constant dense<0.000000e+00> : vector<16x256xf32>
    %38 = tpu.matmul %36, %37, %cst_23 {dimension_numbers = #tpu.dot_dimension_numbers<[1], [0], [0], [1], [0, 0, 1, 1], [], []>} : vector<16x128xbf16>, vector<128x256xbf16>, vector<16x256xf32> -> vector<16x256xf32>
    %c0_24 = arith.constant 0 : index
    %c640 = arith.constant 640 : index
    %39 = vector.load %arg2[%c0_24, %c640] : memref<1x2304xf32, #tpu.memory_space<vmem>>, vector<1x256xf32>
    %40 = vector.broadcast %39 : vector<1x256xf32> to vector<16x256xf32>
    %41 = arith.addf %38, %40 : vector<16x256xf32>
    %42 = math.tanh %41 : vector<16x256xf32>
    %43 = arith.truncf %42 : vector<16x256xf32> to vector<16x256xbf16>
    %44 = vector.extract_strided_slice %43 {offsets = [0, 0], sizes = [16, 128], strides = [1, 1]} : vector<16x256xbf16> to vector<16x128xbf16>
    %c0_25 = arith.constant 0 : index
    %c0_26 = arith.constant 0 : index
    %45 = vector.load %arg6[%c0_25, %c0_26] : memref<256x512xbf16, #tpu.memory_space<vmem>>, vector<128x512xbf16>
    %cst_27 = arith.constant dense<0.000000e+00> : vector<16x512xf32>
    %46 = tpu.matmul %44, %45, %cst_27 {dimension_numbers = #tpu.dot_dimension_numbers<[1], [0], [0], [1], [0, 0, 1, 1], [], []>} : vector<16x128xbf16>, vector<128x512xbf16>, vector<16x512xf32> -> vector<16x512xf32>
    %47 = vector.extract_strided_slice %43 {offsets = [0, 128], sizes = [16, 128], strides = [1, 1]} : vector<16x256xbf16> to vector<16x128xbf16>
    %c128_28 = arith.constant 128 : index
    %c0_29 = arith.constant 0 : index
    %48 = vector.load %arg6[%c128_28, %c0_29] : memref<256x512xbf16, #tpu.memory_space<vmem>>, vector<128x512xbf16>
    %cst_30 = arith.constant dense<0.000000e+00> : vector<16x512xf32>
    %49 = tpu.matmul %47, %48, %cst_30 {dimension_numbers = #tpu.dot_dimension_numbers<[1], [0], [0], [1], [0, 0, 1, 1], [], []>} : vector<16x128xbf16>, vector<128x512xbf16>, vector<16x512xf32> -> vector<16x512xf32>
    %50 = arith.addf %46, %49 : vector<16x512xf32>
    %c0_31 = arith.constant 0 : index
    %c896 = arith.constant 896 : index
    %51 = vector.load %arg2[%c0_31, %c896] : memref<1x2304xf32, #tpu.memory_space<vmem>>, vector<1x512xf32>
    %52 = vector.broadcast %51 : vector<1x512xf32> to vector<16x512xf32>
    %53 = arith.addf %50, %52 : vector<16x512xf32>
    %54 = math.tanh %53 : vector<16x512xf32>
    %55 = arith.truncf %54 : vector<16x512xf32> to vector<16x512xbf16>
    %56 = vector.extract_strided_slice %55 {offsets = [0, 0], sizes = [16, 128], strides = [1, 1]} : vector<16x512xbf16> to vector<16x128xbf16>
    %c128_32 = arith.constant 128 : index
    %c0_33 = arith.constant 0 : index
    %57 = vector.load %arg5[%c128_32, %c0_33] : memref<640x256xbf16, #tpu.memory_space<vmem>>, vector<128x256xbf16>
    %cst_34 = arith.constant dense<0.000000e+00> : vector<16x256xf32>
    %58 = tpu.matmul %56, %57, %cst_34 {dimension_numbers = #tpu.dot_dimension_numbers<[1], [0], [0], [1], [0, 0, 1, 1], [], []>} : vector<16x128xbf16>, vector<128x256xbf16>, vector<16x256xf32> -> vector<16x256xf32>
    %59 = vector.extract_strided_slice %55 {offsets = [0, 128], sizes = [16, 128], strides = [1, 1]} : vector<16x512xbf16> to vector<16x128xbf16>
    %c256_35 = arith.constant 256 : index
    %c0_36 = arith.constant 0 : index
    %60 = vector.load %arg5[%c256_35, %c0_36] : memref<640x256xbf16, #tpu.memory_space<vmem>>, vector<128x256xbf16>
    %cst_37 = arith.constant dense<0.000000e+00> : vector<16x256xf32>
    %61 = tpu.matmul %59, %60, %cst_37 {dimension_numbers = #tpu.dot_dimension_numbers<[1], [0], [0], [1], [0, 0, 1, 1], [], []>} : vector<16x128xbf16>, vector<128x256xbf16>, vector<16x256xf32> -> vector<16x256xf32>
    %62 = arith.addf %58, %61 : vector<16x256xf32>
    %63 = vector.extract_strided_slice %55 {offsets = [0, 256], sizes = [16, 128], strides = [1, 1]} : vector<16x512xbf16> to vector<16x128xbf16>
    %c384_38 = arith.constant 384 : index
    %c0_39 = arith.constant 0 : index
    %64 = vector.load %arg5[%c384_38, %c0_39] : memref<640x256xbf16, #tpu.memory_space<vmem>>, vector<128x256xbf16>
    %cst_40 = arith.constant dense<0.000000e+00> : vector<16x256xf32>
    %65 = tpu.matmul %63, %64, %cst_40 {dimension_numbers = #tpu.dot_dimension_numbers<[1], [0], [0], [1], [0, 0, 1, 1], [], []>} : vector<16x128xbf16>, vector<128x256xbf16>, vector<16x256xf32> -> vector<16x256xf32>
    %66 = arith.addf %62, %65 : vector<16x256xf32>
    %67 = vector.extract_strided_slice %55 {offsets = [0, 384], sizes = [16, 128], strides = [1, 1]} : vector<16x512xbf16> to vector<16x128xbf16>
    %c512_41 = arith.constant 512 : index
    %c0_42 = arith.constant 0 : index
    %68 = vector.load %arg5[%c512_41, %c0_42] : memref<640x256xbf16, #tpu.memory_space<vmem>>, vector<128x256xbf16>
    %cst_43 = arith.constant dense<0.000000e+00> : vector<16x256xf32>
    %69 = tpu.matmul %67, %68, %cst_43 {dimension_numbers = #tpu.dot_dimension_numbers<[1], [0], [0], [1], [0, 0, 1, 1], [], []>} : vector<16x128xbf16>, vector<128x256xbf16>, vector<16x256xf32> -> vector<16x256xf32>
    %70 = arith.addf %66, %69 : vector<16x256xf32>
    %c0_44 = arith.constant 0 : index
    %c1408 = arith.constant 1408 : index
    %71 = vector.load %arg2[%c0_44, %c1408] : memref<1x2304xf32, #tpu.memory_space<vmem>>, vector<1x256xf32>
    %72 = vector.broadcast %71 : vector<1x256xf32> to vector<16x256xf32>
    %73 = arith.addf %70, %72 : vector<16x256xf32>
    %74 = math.tanh %73 : vector<16x256xf32>
    %75 = arith.truncf %74 : vector<16x256xf32> to vector<16x256xbf16>
    %76 = vector.extract_strided_slice %75 {offsets = [0, 0], sizes = [16, 128], strides = [1, 1]} : vector<16x256xbf16> to vector<16x128xbf16>
    %c640_45 = arith.constant 640 : index
    %c0_46 = arith.constant 0 : index
    %77 = vector.load %arg4[%c640_45, %c0_46] : memref<1408x128xbf16, #tpu.memory_space<vmem>>, vector<128x128xbf16>
    %cst_47 = arith.constant dense<0.000000e+00> : vector<16x128xf32>
    %78 = tpu.matmul %76, %77, %cst_47 {dimension_numbers = #tpu.dot_dimension_numbers<[1], [0], [0], [1], [0, 0, 1, 1], [], []>} : vector<16x128xbf16>, vector<128x128xbf16>, vector<16x128xf32> -> vector<16x128xf32>
    %79 = vector.extract_strided_slice %75 {offsets = [0, 128], sizes = [16, 128], strides = [1, 1]} : vector<16x256xbf16> to vector<16x128xbf16>
    %c768 = arith.constant 768 : index
    %c0_48 = arith.constant 0 : index
    %80 = vector.load %arg4[%c768, %c0_48] : memref<1408x128xbf16, #tpu.memory_space<vmem>>, vector<128x128xbf16>
    %cst_49 = arith.constant dense<0.000000e+00> : vector<16x128xf32>
    %81 = tpu.matmul %79, %80, %cst_49 {dimension_numbers = #tpu.dot_dimension_numbers<[1], [0], [0], [1], [0, 0, 1, 1], [], []>} : vector<16x128xbf16>, vector<128x128xbf16>, vector<16x128xf32> -> vector<16x128xf32>
    %82 = arith.addf %78, %81 : vector<16x128xf32>
    %c0_50 = arith.constant 0 : index
    %c1664 = arith.constant 1664 : index
    %83 = vector.load %arg2[%c0_50, %c1664] : memref<1x2304xf32, #tpu.memory_space<vmem>>, vector<1x128xf32>
    %84 = vector.broadcast %83 : vector<1x128xf32> to vector<16x128xf32>
    %85 = arith.addf %82, %84 : vector<16x128xf32>
    %86 = math.tanh %85 : vector<16x128xf32>
    %87 = arith.truncf %86 : vector<16x128xf32> to vector<16x128xbf16>
    %c896_51 = arith.constant 896 : index
    %c0_52 = arith.constant 0 : index
    %88 = vector.load %arg4[%c896_51, %c0_52] : memref<1408x128xbf16, #tpu.memory_space<vmem>>, vector<128x128xbf16>
    %cst_53 = arith.constant dense<0.000000e+00> : vector<16x128xf32>
    %89 = tpu.matmul %87, %88, %cst_53 {dimension_numbers = #tpu.dot_dimension_numbers<[1], [0], [0], [1], [0, 0, 1, 1], [], []>} : vector<16x128xbf16>, vector<128x128xbf16>, vector<16x128xf32> -> vector<16x128xf32>
    %c0_54 = arith.constant 0 : index
    %c1792 = arith.constant 1792 : index
    %90 = vector.load %arg2[%c0_54, %c1792] : memref<1x2304xf32, #tpu.memory_space<vmem>>, vector<1x128xf32>
    %91 = vector.broadcast %90 : vector<1x128xf32> to vector<16x128xf32>
    %92 = arith.addf %89, %91 : vector<16x128xf32>
    %93 = math.tanh %92 : vector<16x128xf32>
    %94 = arith.truncf %93 : vector<16x128xf32> to vector<16x128xbf16>
    %c1024 = arith.constant 1024 : index
    %c0_55 = arith.constant 0 : index
    %95 = vector.load %arg4[%c1024, %c0_55] : memref<1408x128xbf16, #tpu.memory_space<vmem>>, vector<128x128xbf16>
    %cst_56 = arith.constant dense<0.000000e+00> : vector<16x128xf32>
    %96 = tpu.matmul %94, %95, %cst_56 {dimension_numbers = #tpu.dot_dimension_numbers<[1], [0], [0], [1], [0, 0, 1, 1], [], []>} : vector<16x128xbf16>, vector<128x128xbf16>, vector<16x128xf32> -> vector<16x128xf32>
    %c0_57 = arith.constant 0 : index
    %c1920 = arith.constant 1920 : index
    %97 = vector.load %arg2[%c0_57, %c1920] : memref<1x2304xf32, #tpu.memory_space<vmem>>, vector<1x128xf32>
    %98 = vector.broadcast %97 : vector<1x128xf32> to vector<16x128xf32>
    %99 = arith.addf %96, %98 : vector<16x128xf32>
    %100 = math.tanh %99 : vector<16x128xf32>
    %101 = arith.truncf %100 : vector<16x128xf32> to vector<16x128xbf16>
    %c1152 = arith.constant 1152 : index
    %c0_58 = arith.constant 0 : index
    %102 = vector.load %arg4[%c1152, %c0_58] : memref<1408x128xbf16, #tpu.memory_space<vmem>>, vector<128x128xbf16>
    %cst_59 = arith.constant dense<0.000000e+00> : vector<16x128xf32>
    %103 = tpu.matmul %101, %102, %cst_59 {dimension_numbers = #tpu.dot_dimension_numbers<[1], [0], [0], [1], [0, 0, 1, 1], [], []>} : vector<16x128xbf16>, vector<128x128xbf16>, vector<16x128xf32> -> vector<16x128xf32>
    %c0_60 = arith.constant 0 : index
    %c2048 = arith.constant 2048 : index
    %104 = vector.load %arg2[%c0_60, %c2048] : memref<1x2304xf32, #tpu.memory_space<vmem>>, vector<1x128xf32>
    %105 = vector.broadcast %104 : vector<1x128xf32> to vector<16x128xf32>
    %106 = arith.addf %103, %105 : vector<16x128xf32>
    %107 = math.tanh %106 : vector<16x128xf32>
    %108 = arith.truncf %107 : vector<16x128xf32> to vector<16x128xbf16>
    %c1280 = arith.constant 1280 : index
    %c0_61 = arith.constant 0 : index
    %109 = vector.load %arg4[%c1280, %c0_61] : memref<1408x128xbf16, #tpu.memory_space<vmem>>, vector<128x128xbf16>
    %cst_62 = arith.constant dense<0.000000e+00> : vector<16x128xf32>
    %110 = tpu.matmul %108, %109, %cst_62 {dimension_numbers = #tpu.dot_dimension_numbers<[1], [0], [0], [1], [0, 0, 1, 1], [], []>} : vector<16x128xbf16>, vector<128x128xbf16>, vector<16x128xf32> -> vector<16x128xf32>
    %c0_63 = arith.constant 0 : index
    %c2176 = arith.constant 2176 : index
    %111 = vector.load %arg2[%c0_63, %c2176] : memref<1x2304xf32, #tpu.memory_space<vmem>>, vector<1x128xf32>
    %112 = vector.broadcast %111 : vector<1x128xf32> to vector<16x128xf32>
    %113 = arith.addf %110, %112 : vector<16x128xf32>
    %cst_64 = arith.constant 0.00999999977 : f32
    %114 = vector.broadcast %cst_64 : f32 to vector<16x128xf32>
    %115 = arith.mulf %114, %113 : vector<16x128xf32>
    %116 = arith.maximumf %113, %115 : vector<16x128xf32>
    %c0_65 = arith.constant 0 : index
    %c0_66 = arith.constant 0 : index
    %117 = vector.load %arg1[%c0_65, %c0_66] : memref<16x144xf32, #tpu.memory_space<vmem>>, vector<16x128xf32>
    %c0_67 = arith.constant 0 : index
    %c128_68 = arith.constant 128 : index
    %118 = vector.load %arg1[%c0_67, %c128_68] : memref<16x144xf32, #tpu.memory_space<vmem>>, vector<8x16xf32>
    %119 = arith.mulf %116, %117 : vector<16x128xf32>
    %cst_69 = arith.constant dense<0.000000e+00> : vector<8x128xf32>
    %120 = tpu.matmul %118, %119, %cst_69 {dimension_numbers = #tpu.dot_dimension_numbers<[1], [0], [0], [1], [0, 0, 1, 1], [], []>, precision = #tpu.contract_precision<fp32>} : vector<8x16xf32>, vector<16x128xf32>, vector<8x128xf32> -> vector<8x128xf32>
    %c0_70 = arith.constant 0 : index
    %c128_71 = arith.constant 128 : index
    %121 = vector.load %arg0[%c0_70, %c128_71] : memref<16x256xf32, #tpu.memory_space<vmem>>, vector<8x128xf32>
    %122 = arith.addf %121, %120 : vector<8x128xf32>
    %c0_72 = arith.constant 0 : index
    %c0_73 = arith.constant 0 : index
    %123 = vector.load %arg7[%c0_72, %c0_73] : memref<8x256xf32, #tpu.memory_space<vmem>>, vector<8x128xf32>
    tpu.vector_store %arg7[%c0_72, %c0_73], %122 {strides = array<i32>} : memref<8x256xf32, #tpu.memory_space<vmem>>, vector<8x128xf32>,
    %124 = arith.truncf %122 : vector<8x128xf32> to vector<8x128xbf16>
    %c0_74 = arith.constant 0 : index
    %c0_75 = arith.constant 0 : index
    %125 = vector.load %arg3[%c0_74, %c0_75] : memref<128x128xbf16, #tpu.memory_space<vmem>>, vector<128x128xbf16>
    %cst_76 = arith.constant dense<0.000000e+00> : vector<8x128xf32>
    %126 = tpu.matmul %124, %125, %cst_76 {dimension_numbers = #tpu.dot_dimension_numbers<[1], [0], [0], [1], [0, 0, 1, 1], [], []>} : vector<8x128xbf16>, vector<128x128xbf16>, vector<8x128xf32> -> vector<8x128xf32>
    %c0_77 = arith.constant 0 : index
    %c128_78 = arith.constant 128 : index
    %127 = vector.load %arg7[%c0_77, %c128_78] : memref<8x256xf32, #tpu.memory_space<vmem>>, vector<8x128xf32>
    tpu.vector_store %arg7[%c0_77, %c128_78], %126 {strides = array<i32>} : memref<8x256xf32, #tpu.memory_space<vmem>>, vector<8x128xf32>,
    return
  }
}

</mosaic_0001>

<bundles_post_ra>
// kernel: lko_mlp_forward.1
= control target key start
LH: loop header
LB: loop body
LE: loop exit
PB: predicated region body
PF: predicated region fallthrough
CT: control target
= control target key end

     0   :  { %12 = vsyncpa [#allocation3], 0  ;;  %s4023_s0 = inlined_call_operand.vmem [shape: f32[16,256], index: 0, kind: input, shape index: {}]   ;;  %s4024_s1 = inlined_call_operand.vmem [shape: f32[16,144], index: 1, kind: input, shape index: {}]   ;;  %s4025_s2 = inlined_call_operand.vmem [shape: f32[1,2304], index: 2, kind: input, shape index: {}]   ;;  %s4026_s3 = inlined_call_operand.vmem [shape: bf16[128,128], index: 3, kind: input, shape index: {}]   ;;  %s4027_s4 = inlined_call_operand.hbm [shape: bf16[1408,128], index: 4, kind: input, shape index: {}]   ;;  %s4028_s5 = inlined_call_operand.hbm [shape: bf16[640,256], index: 5, kind: input, shape index: {}]   ;;  %s4029_s6 = inlined_call_operand.hbm [shape: bf16[256,512], index: 6, kind: input, shape index: {}]   ;;  %s4030_s7 = inlined_call_operand.vmem [shape: f32[8,256], index: 7, kind: output, shape index: {}]  }
   0x1   :  { %13 = vsyncpa [#allocation5], 0  ;;  %s39_s26 = sshll.u32 %s4028_s5, 4  ;;  %s3848_s27 = smov [#allocation4]   ;;  %s40_s26 = int_to_ptr.hbm [resolvable:$true] %s39_s26 }
   0x2   :  { %s41_s28 = sshll.u32 %s3848_s27, 4  ;;  %s26_s8 = sshll.u32 %s4027_s4, 4  ;;  %s42_s28 = int_to_ptr.vmem [resolvable:$true] %s41_s28  ;;  %s27_s8 = int_to_ptr.hbm [resolvable:$true] %s26_s8 }
   0x3   :  { %s3849_s9 = smov 128   ;;  %s3850_s10 = smov 8  }
   0x4   :  { %47 = dma.hbm_to_vmem [thread:$0]  %s40_s26, 10240, %s42_s28, [#allocation5], %s3849_s9, %s3849_s9, %s3850_s10  }
   0x5   :  { %s3851_s11 = smov [#allocation2]   ;;  %s3852_s13 = smov 64  }
   0x6   :  { %s28_s12 = sshll.u32 %s3851_s11, 4  ;;  %s3853_s14 = smov 4   ;;  %s29_s12 = int_to_ptr.vmem [resolvable:$true] %s28_s12 }
   0x7   :  { %34 = dma.hbm_to_vmem [thread:$0]  %s27_s8, 11264, %s29_s12, [#allocation3], %s3852_s13, %s3852_s13, %s3853_s14  }
   0x8   :  { %s52_s16 = sshll.u32 %s4029_s6, 4  ;;  %s3854_s17 = smov [#allocation6]   ;;  %s53_s16 = int_to_ptr.hbm [resolvable:$true] %s52_s16 }
   0x9   :  { %s54_s18 = sshll.u32 %s3854_s17, 4  ;;  %s3855_s19 = smov 256   ;;  %s55_s18 = int_to_ptr.vmem [resolvable:$true] %s54_s18 }
   0xa   :  { %s3856_s4 = smov 16  }
   0xb   :  { %60 = dma.hbm_to_vmem [thread:$0]  %s53_s16, 8192, %s55_s18, [#allocation5], %s3855_s19, %s3855_s19, %s3856_s4  }
   0xc   :  { %3844 = dma.done.wait [#allocation3], 11264  }
   0xd   :  { %3845 = vsyncadd [#allocation3], 4294956032 }
   0xe   :  { %3846 = dma.done.wait [#allocation5], 18432  }
   0xf   :  { %3847 = vsyncadd [#allocation5], 4294948864  ;;  %v3452_v0 = vld [vmem:[#allocation2 + $0x38] sm:$0xff]  ;;  %v3451_v1 = vld [vmem:[#allocation2 + $0x30] sm:$0xff]  ;;  %vm2234_vm0 = vcmask 130048  }
  0x10   :  { %144 = vmatpush.bf16.msra.mxu0 %v3452_v0  ;;  %v3460_v2 = vld [vmem:[#allocation2 + $0x78] sm:$0xff]  ;;  %v3450_v3 = vld [vmem:[#allocation2 + $0x28] sm:$0xff]  ;;  %v3459_v4 = vld [vmem:[#allocation2 + $0x70] sm:$0xff] }
  0x11   :  { %229 = vmatpush.bf16.msra.mxu2 %v3460_v2  ;;  %v3458_v5 = vld [vmem:[#allocation2 + $0x68] sm:$0xff]  ;;  %v3449_v6 = vld [vmem:[#allocation2 + $0x20] sm:$0xff]  ;;  %v3448_v7 = vld [vmem:[#allocation2 + $0x18] sm:$0xff] }
  0x12   :  { %v3447_v8 = vld [vmem:[#allocation2 + $0x10] sm:$0xff]  ;;  %v3446_v9 = vld [vmem:[#allocation2 + $0x8] sm:$0xff]  ;;  %v3445_v10 = vld [vmem:[#allocation2] sm:$0xff] }
  0x13   :  { %v73_v11 = vld [vmem:[%s4023_s0] sm:$0xff]  ;;  %v74_v12 = vld [vmem:[%s4023_s0 + $0x10] sm:$0xff]  ;;  %v3456_v15 = vld [vmem:[#allocation2 + $0x58] sm:$0xff] }
  0x14   :  { %145 = vmatpush.bf16.msra.mxu0 %v3451_v1  ;;  %v75_v13 = vpack.c.bf16 %v74_v12, %v73_v11  ;;  %v3457_v14 = vld [vmem:[#allocation2 + $0x60] sm:$0xff]  ;;  %v3455_v16 = vld [vmem:[#allocation2 + $0x50] sm:$0xff]  ;;  %v3454_v17 = vld [vmem:[#allocation2 + $0x48] sm:$0xff] }
  0x15   :  { %230 = vmatpush.bf16.msra.mxu2 %v3459_v4  ;;  %v3453_v18 = vld [vmem:[#allocation2 + $0x40] sm:$0xff]  ;;  %v3468_v19 = vld [vmem:[#allocation2 + $0xb8] sm:$0xff]  ;;  %v3467_v20 = vld [vmem:[#allocation2 + $0xb0] sm:$0xff] }
  0x16   :  { %v3466_v21 = vld [vmem:[#allocation2 + $0xa8] sm:$0xff]  ;;  %v3694_v23 = vld [vmem:[%s4025_s2] ss:$0 sm:$0xff]  ;;  %v3464_v31 = vld [vmem:[#allocation2 + $0x98] sm:$0xff] }
  0x17   :  { %v3465_v30 = vld [vmem:[#allocation2 + $0xa0] sm:$0xff]  ;;  %v3463_v32 = vld [vmem:[#allocation2 + $0x90] sm:$0xff]  ;;  %v3462_v33 = vld [vmem:[#allocation2 + $0x88] sm:$0xff] }
  0x18   :  { %146 = vmatpush.bf16.msra.mxu0 %v3450_v3  ;;  %v3461_v34 = vld [vmem:[#allocation2 + $0x80] sm:$0xff]  ;;  %v3476_v35 = vld [vmem:[#allocation2 + $0xf8] sm:$0xff]  ;;  %v3475_v36 = vld [vmem:[#allocation2 + $0xf0] sm:$0xff] }
  0x19   :  { %231 = vmatpush.bf16.msra.mxu2 %v3458_v5  ;;  %399 = vmatpush.bf16.msra.mxu3 %v3476_v35  ;;  %v3474_v37 = vld [vmem:[#allocation2 + $0xe8] sm:$0xff]  ;;  %v3695_v39 = vld [vmem:[%s4025_s2 + $0x1] ss:$0 sm:$0xff]  ;;  %v3472_v47 = vld [vmem:[#allocation2 + $0xd8] sm:$0xff] }
  0x1a   :  { %v3473_v46 = vld [vmem:[#allocation2 + $0xe0] sm:$0xff]  ;;  %v3471_v48 = vld [vmem:[#allocation2 + $0xd0] sm:$0xff]  ;;  %v3470_v49 = vld [vmem:[#allocation2 + $0xc8] sm:$0xff] }
  0x1b   :  { %v3469_v50 = vld [vmem:[#allocation2 + $0xc0] sm:$0xff]  ;;  %v3484_v51 = vld [vmem:[#allocation2 + $0x138] sm:$0xff]  ;;  %v3483_v52 = vld [vmem:[#allocation2 + $0x130] sm:$0xff] }
  0x1c   :  { %147 = vmatpush.bf16.msra.mxu0 %v3449_v6  ;;  %v3482_v53 = vld [vmem:[#allocation2 + $0x128] sm:$0xff]  ;;  %v3696_v55 = vld [vmem:[%s4025_s2 + $0x2] ss:$0 sm:$0xff]  ;;  %v3480_v63 = vld [vmem:[#allocation2 + $0x118] sm:$0xff] }
  0x1d   :  { %232 = vmatpush.bf16.msra.mxu2 %v3457_v14  ;;  %400 = vmatpush.bf16.msra.mxu3 %v3475_v36  ;;  %v3481_v62 = vld [vmem:[#allocation2 + $0x120] sm:$0xff]  ;;  %v3479_v0 = vld [vmem:[#allocation2 + $0x110] sm:$0xff]  ;;  %v3478_v1 = vld [vmem:[#allocation2 + $0x108] sm:$0xff] }
  0x1e   :  { %v3477_v2 = vld [vmem:[#allocation2 + $0x100] sm:$0xff]  ;;  %v2703_v3 = vld [vmem:[#allocation4 + $0x70] sm:$0xf]  ;;  %v3500_v4 = vld [vmem:[#allocation4 + $0x74] sm:$0xf0] }
  0x1f   :  { %v3499_v5 = vld [vmem:[#allocation4 + $0x74] sm:$0xf]  ;;  %v2704_v6 = vor.u32 %v3500_v4, %v2703_v3  ;;  %v3497_v11 = vld [vmem:[#allocation4 + $0x64] sm:$0xf]  ;;  %v2697_v12 = vld [vmem:[#allocation4 + $0x68] sm:$0xf0] }
  0x20   :  { %148 = vmatpush.bf16.msra.mxu0 %v3448_v7  ;;  %v2705_v7 = vld [vmem:[#allocation4 + $0x78] sm:$0xf0]  ;;  %v2700_v14 = vor.u32 %v3497_v11, %v2697_v12  ;;  %v2671_v35 = vld [vmem:[#allocation4 + $0x30] sm:$0xf]  ;;  %v3492_v36 = vld [vmem:[#allocation4 + $0x34] sm:$0xf0] }
  0x21   :  { %233 = vmatpush.bf16.msra.mxu2 %v3456_v15  ;;  %401 = vmatpush.bf16.msra.mxu3 %v3474_v37  ;;  %v2687_v15 = vld [vmem:[#allocation4 + $0x50] sm:$0xf]  ;;  %v3491_v37 = vld [vmem:[#allocation4 + $0x34] sm:$0xf]  ;;  %v3562_v4 = vld [vmem:[#allocation6 + $0x1ec] sm:$0xf] }
  0x22   :  { %603 = vmatpush.bf16.msra.mxu1 %v2704_v6  ;;  %v2807_v6 = vld [vmem:[#allocation6 + $0x1c0] sm:$0xf] }
  0x24   :  { %149 = vmatpush.bf16.msra.mxu0 %v3447_v8  ;;  %v2695_v8 = vld [vmem:[#allocation4 + $0x60] sm:$0xf] }
  0x25   :  { %234 = vmatpush.bf16.msra.mxu2 %v3455_v16  ;;  %402 = vmatpush.bf16.msra.mxu3 %v3473_v46  ;;  %v3496_v16 = vld [vmem:[#allocation4 + $0x54] sm:$0xf0] }
  0x28   :  { %150 = vmatpush.bf16.msra.mxu0 %v3446_v9  ;;  %v3498_v9 = vld [vmem:[#allocation4 + $0x64] sm:$0xf0] }
  0x29   :  { %235 = vmatpush.bf16.msra.mxu2 %v3454_v17  ;;  %403 = vmatpush.bf16.msra.mxu3 %v3472_v47  ;;  %v3495_v17 = vld [vmem:[#allocation4 + $0x54] sm:$0xf]  ;;  %v2655_v47 = vld [vmem:[#allocation4 + $0x10] sm:$0xf] }
  0x2c   :  { %151 = vmatpush.bf16.msra.mxu0 %v3445_v10  ;;  %v2708_v10 = vor.u32 %v3499_v5, %v2705_v7  ;;  %v2833_v5 = vld [vmem:[#allocation6 + $0x1f8] sm:$0xf0] }
  0x2d   :  { %236 = vmatpush.bf16.msra.mxu2 %v3453_v18  ;;  %404 = vmatpush.bf16.msra.mxu3 %v3471_v48  ;;  %v2689_v18 = vld [vmem:[#allocation4 + $0x58] sm:$0xf0]  ;;  %v3488_v48 = vld [vmem:[#allocation4 + $0x14] sm:$0xf0]  ;;  %v2836_v7 = vor.u32 %v3562_v4, %v2833_v5  ;;  %v2751_v4 = vld [vmem:[#allocation6 + $0x148] sm:$0xf] }
  0x2f   :  { %152 = vmatmul.bf16.vlgmr.msra.gmra.mxu0 %v75_v13  ;;  %v2696_v13 = vor.u32 %v3498_v9, %v2695_v8  ;;  %v3559_v8 = vld [vmem:[#allocation6 + $0x1cc] sm:$0xf0]  ;;  %v3557_v9 = vld [vmem:[#allocation6 + $0x1c4] sm:$0xf] }
  0x30   :  { %484 = vmatpush.bf16.msrb.mxu0 %v3484_v51  ;;  %v2657_v51 = vld [vmem:[#allocation4 + $0x18] sm:$0xf0]  ;;  %v2808_v11 = vor.u32 %v3559_v8, %v2807_v6  ;;  %v3544_v6 = vld [vmem:[#allocation6 + $0x154] sm:$0xf0] }
  0x31   :  { %314 = vmatpush.bf16.msrb.mxu2 %v3468_v19  ;;  %405 = vmatpush.bf16.msra.mxu3 %v3470_v49  ;;  %v2688_v19 = vor.u32 %v3496_v16, %v2687_v15  ;;  %v3487_v49 = vld [vmem:[#allocation4 + $0x14] sm:$0xf]  ;;  %v3558_v15 = vld [vmem:[#allocation6 + $0x1cc] sm:$0xf]  ;;  %v2753_v8 = vld [vmem:[#allocation6 + $0x158] sm:$0xf0] }
  0x32   :  { %604 = vmatpush.bf16.msra.mxu1 %v2696_v13  ;;  %v2815_v13 = vld [vmem:[#allocation6 + $0x1c8] sm:$0xf] }
  0x34   :  { %485 = vmatpush.bf16.msrb.mxu0 %v3483_v52  ;;  %v2647_v52 = vld [vmem:[#allocation4] sm:$0xf] }
  0x35   :  { %315 = vmatpush.bf16.msrb.mxu2 %v3467_v20  ;;  %406 = vmatpush.bf16.msra.mxu3 %v3469_v50  ;;  %v2692_v20 = vor.u32 %v3495_v17, %v2689_v18  ;;  %v2656_v50 = vor.u32 %v3488_v48, %v2655_v47  ;;  %v2817_v17 = vld [vmem:[#allocation6 + $0x1d8] sm:$0xf0]  ;;  %v2791_v18 = vld [vmem:[#allocation6 + $0x1a0] sm:$0xf] }
  0x36   :  { %605 = vmatpush.bf16.msra.mxu1 %v2688_v19  ;;  %v3555_v19 = vld [vmem:[#allocation6 + $0x1ac] sm:$0xf0] }
  0x38   :  { %486 = vmatpush.bf16.msrb.mxu0 %v3482_v53  ;;  %v3486_v53 = vld [vmem:[#allocation4 + $0x4] sm:$0xf0] }
  0x39   :  { %316 = vmatpush.bf16.msrb.mxu2 %v3466_v21 }
  0x3c   :  { %487 = vmatpush.bf16.msrb.mxu0 %v3481_v62 }
  0x3d   :  { %317 = vmatpush.bf16.msrb.mxu2 %v3465_v30  ;;  %v3494_v30 = vld [vmem:[#allocation4 + $0x44] sm:$0xf0] }
  0x40   :  { %488 = vmatpush.bf16.msrb.mxu0 %v3480_v63  ;;  %v2825_v63 = vld [vmem:[#allocation6 + $0x1f0] sm:$0xf0] }
  0x41   :  { %318 = vmatpush.bf16.msrb.mxu2 %v3464_v31  ;;  %v3493_v31 = vld [vmem:[#allocation4 + $0x44] sm:$0xf] }
  0x44   :  { %489 = vmatpush.bf16.msrb.mxu0 %v3479_v0  ;;  %v2831_v0 = vld [vmem:[#allocation6 + $0x1e8] sm:$0xf] }
  0x45   :  { %319 = vmatpush.bf16.msrb.mxu2 %v3463_v32 }
  0x48   :  { %490 = vmatpush.bf16.msrb.mxu0 %v3478_v1  ;;  %v3564_v1 = vld [vmem:[#allocation6 + $0x1f4] sm:$0xf0] }
  0x49   :  { %320 = vmatpush.bf16.msrb.mxu2 %v3462_v33  ;;  %v2681_v33 = vld [vmem:[#allocation4 + $0x48] sm:$0xf0]  ;;  %v2832_v3 = vor.u32 %v3564_v1, %v2831_v0  ;;  %v3543_v0 = vld [vmem:[#allocation6 + $0x14c] sm:$0xf0] }
  0x4c   :  { %491 = vmatpush.bf16.msrb.mxu0 %v3477_v2 }
  0x4d   :  { %321 = vmatpush.bf16.msrb.mxu2 %v3461_v34  ;;  %v2684_v34 = vor.u32 %v3493_v31, %v2681_v33  ;;  %v3551_v31 = vld [vmem:[#allocation6 + $0x18c] sm:$0xf0] }
  0xac   :  { %v153_v22 = vpop.f32.mrf.mxu0 }
  0xad   :  { %v154_v24 = vadd.f32 %v3694_v23, %v153_v22  ;;  %v3697_v22 = vld [vmem:[%s4025_s2 + $0x3] ss:$0 sm:$0xff] }
  0xaf   :  { %3704 = vtanh.f32 %v154_v24 }
  0xb4   :  { %v155_v25 = vpop.f32.mrf.mxu0 }
  0xb5   :  { %v156_v26 = vadd.f32 %v3694_v23, %v155_v25  ;;  %v3705_v27 = vpop.eup %3704 }
  0xb7   :  { %3706 = vtanh.f32 %v156_v26 }
  0xbd   :  { %v3707_v28 = vpop.eup %3706 }
  0xbe   :  { %v160_v29 = vpack.c.bf16 %v3707_v28, %v3705_v27 }
  0xc0   :  { %237 = vmatmul.bf16.vlgmr.msra.gmra.mxu2 %v160_v29  ;;  %v2679_v29 = vld [vmem:[#allocation4 + $0x40] sm:$0xf] }
  0xc1   :  { %617 = vmatpush.bf16.msra.mxu2 %v2708_v10  ;;  %v2680_v32 = vor.u32 %v3494_v30, %v2679_v29  ;;  %v2809_v10 = vld [vmem:[#allocation6 + $0x1d0] sm:$0xf0]  ;;  %v2775_v30 = vld [vmem:[#allocation6 + $0x180] sm:$0xf] }
  0xc2   :  { %v2812_v12 = vor.u32 %v3557_v9, %v2809_v10  ;;  %v2752_v9 = vor.u32 %v3544_v6, %v2751_v4  ;;  %v3522_v4 = vld [vmem:[#allocation6 + $0xac] sm:$0xf] }
  0xc3   :  { %606 = vmatpush.bf16.msra.mxu1 %v2680_v32  ;;  %v3549_v32 = vld [vmem:[#allocation6 + $0x184] sm:$0xf] }
  0xc5   :  { %618 = vmatpush.bf16.msra.mxu2 %v2700_v14  ;;  %v3560_v14 = vld [vmem:[#allocation6 + $0x1d4] sm:$0xf0] }
  0xc6   :  { %v2816_v16 = vor.u32 %v3560_v14, %v2815_v13  ;;  %v3537_v13 = vld [vmem:[#allocation6 + $0x124] sm:$0xf] }
  0xc9   :  { %619 = vmatpush.bf16.msra.mxu2 %v2692_v20  ;;  %v2820_v20 = vor.u32 %v3558_v15, %v2817_v17  ;;  %v2729_v15 = vld [vmem:[#allocation6 + $0x130] sm:$0xf0]  ;;  %v3540_v17 = vld [vmem:[#allocation6 + $0x134] sm:$0xf0] }
  0xcd   :  { %620 = vmatpush.bf16.msra.mxu2 %v2684_v34  ;;  %v2777_v34 = vld [vmem:[#allocation6 + $0x190] sm:$0xf0] }
 0x143   :  { %v238_v38 = vpop.f32.mrf.mxu2 }
 0x144   :  { %v239_v40 = vadd.f32 %v3695_v39, %v238_v38  ;;  %v2672_v38 = vor.u32 %v3492_v36, %v2671_v35  ;;  %v2783_v35 = vld [vmem:[#allocation6 + $0x188] sm:$0xf]  ;;  %v3552_v36 = vld [vmem:[#allocation6 + $0x194] sm:$0xf0] }
 0x146   :  { %3708 = vtanh.f32 %v239_v40  ;;  %607 = vmatpush.bf16.msra.mxu1 %v2672_v38  ;;  %v2785_v38 = vld [vmem:[#allocation6 + $0x198] sm:$0xf0] }
 0x14b   :  { %v240_v41 = vpop.f32.mrf.mxu2 }
 0x14c   :  { %v241_v42 = vadd.f32 %v3695_v39, %v240_v41  ;;  %v3709_v43 = vpop.eup %3708  ;;  %v2673_v39 = vld [vmem:[#allocation4 + $0x38] sm:$0xf0]  ;;  %v2663_v41 = vld [vmem:[#allocation4 + $0x20] sm:$0xf] }
 0x14d   :  { %v2676_v40 = vor.u32 %v3491_v37, %v2673_v39  ;;  %v3550_v37 = vld [vmem:[#allocation6 + $0x18c] sm:$0xf]  ;;  %v2776_v39 = vor.u32 %v3551_v31, %v2775_v30 }
 0x14e   :  { %3710 = vtanh.f32 %v241_v42  ;;  %v3490_v42 = vld [vmem:[#allocation4 + $0x24] sm:$0xf0] }
 0x14f   :  { %621 = vmatpush.bf16.msra.mxu2 %v2676_v40 }
 0x154   :  { %v3711_v44 = vpop.eup %3710 }
 0x155   :  { %v245_v45 = vpack.c.bf16 %v3711_v44, %v3709_v43  ;;  %v3489_v43 = vld [vmem:[#allocation4 + $0x24] sm:$0xf]  ;;  %v2664_v44 = vor.u32 %v3490_v42, %v2663_v41  ;;  %v2780_v41 = vor.u32 %v3549_v32, %v2777_v34  ;;  %v2784_v42 = vor.u32 %v3552_v36, %v2783_v35  ;;  %v3534_v32 = vld [vmem:[#allocation6 + $0x10c] sm:$0xf]  ;;  %v2951_v34 = vld [vmem:[#allocation6 + $0xe0] sm:$0xf] }
 0x156   :  { %v3531_v36 = vld [vmem:[#allocation6 + $0xec] sm:$0xf0] }
 0x157   :  { %322 = vmatmul.bf16.vlgmr.msrb.gmra.mxu2 %v245_v45  ;;  %v2665_v45 = vld [vmem:[#allocation4 + $0x28] sm:$0xf0]  ;;  %608 = vmatpush.bf16.msra.mxu1 %v2664_v44  ;;  %v3698_v44 = vld [vmem:[%s4025_s2 + $0x4] ss:$0 sm:$0xff] }
 0x158   :  { %v2668_v46 = vor.u32 %v3489_v43, %v2665_v45  ;;  %v2788_v43 = vor.u32 %v3550_v37, %v2785_v38  ;;  %v3529_v37 = vld [vmem:[#allocation6 + $0xe4] sm:$0xf]  ;;  %v2953_v38 = vld [vmem:[#allocation6 + $0xf0] sm:$0xf0] }
 0x15a   :  { %622 = vmatpush.bf16.msra.mxu2 %v2668_v46 }
 0x15b   :  { %609 = vmatpush.bf16.msra.mxu1 %v2656_v50 }
 0x1da   :  { %v323_v54 = vpop.f32.mrf.mxu2 }
 0x1db   :  { %v324_v56 = vadd.f32 %v3696_v55, %v323_v54  ;;  %v2660_v54 = vor.u32 %v3487_v49, %v2657_v51  ;;  %v2759_v51 = vld [vmem:[#allocation6 + $0x160] sm:$0xf] }
 0x1dd   :  { %3712 = vtanh.f32 %v324_v56  ;;  %v2649_v56 = vld [vmem:[#allocation4 + $0x8] sm:$0xf0]  ;;  %623 = vmatpush.bf16.msra.mxu2 %v2660_v54 }
 0x1e2   :  { %v325_v57 = vpop.f32.mrf.mxu2 }
 0x1e3   :  { %v326_v58 = vadd.f32 %v3696_v55, %v325_v57  ;;  %v3713_v59 = vpop.eup %3712  ;;  %v3485_v55 = vld [vmem:[#allocation4 + $0x4] sm:$0xf]  ;;  %v2648_v57 = vor.u32 %v3486_v53, %v2647_v52  ;;  %v3547_v52 = vld [vmem:[#allocation6 + $0x16c] sm:$0xf0] }
 0x1e4   :  { %v3545_v53 = vld [vmem:[#allocation6 + $0x164] sm:$0xf]  ;;  %v2760_v54 = vor.u32 %v3547_v52, %v2759_v51  ;;  %v2937_v51 = vld [vmem:[#allocation6 + $0xd0] sm:$0xf0]  ;;  %v2943_v52 = vld [vmem:[#allocation6 + $0xc8] sm:$0xf] }
 0x1e5   :  { %3714 = vtanh.f32 %v326_v58  ;;  %v2652_v58 = vor.u32 %v3485_v55, %v2649_v56  ;;  %610 = vmatpush.bf16.msra.mxu1 %v2648_v57  ;;  %v2761_v55 = vld [vmem:[#allocation6 + $0x170] sm:$0xf0]  ;;  %v2767_v56 = vld [vmem:[#allocation6 + $0x168] sm:$0xf]  ;;  %v3548_v57 = vld [vmem:[#allocation6 + $0x174] sm:$0xf0] }
 0x1e7   :  { %624 = vmatpush.bf16.msra.mxu2 %v2652_v58  ;;  %v2764_v58 = vor.u32 %v3545_v53, %v2761_v55  ;;  %v3526_v55 = vld [vmem:[#allocation6 + $0xcc] sm:$0xf] }
 0x1e9   :  { %895 = vmatpush.bf16.msrb.mxu1 %v2832_v3  ;;  %v2745_v3 = vld [vmem:[#allocation6 + $0x150] sm:$0xf0] }
 0x1eb   :  { %v3715_v60 = vpop.eup %3714  ;;  %909 = vmatpush.bf16.msrb.mxu2 %v2836_v7  ;;  %v3542_v7 = vld [vmem:[#allocation6 + $0x14c] sm:$0xf] }
 0x1ec   :  { %v330_v61 = vpack.c.bf16 %v3715_v60, %v3713_v59  ;;  %v2823_v59 = vld [vmem:[#allocation6 + $0x1e0] sm:$0xf]  ;;  %v3563_v60 = vld [vmem:[#allocation6 + $0x1ec] sm:$0xf0]  ;;  %v2756_v10 = vor.u32 %v3542_v7, %v2753_v8 }
 0x1ed   :  { %v2824_v62 = vor.u32 %v3563_v60, %v2823_v59  ;;  %896 = vmatpush.bf16.msrb.mxu1 %v2816_v16  ;;  %v2768_v59 = vor.u32 %v3548_v57, %v2767_v56  ;;  %v3546_v60 = vld [vmem:[#allocation6 + $0x16c] sm:$0xf]  ;;  %v2735_v16 = vld [vmem:[#allocation6 + $0x128] sm:$0xf]  ;;  %v2945_v56 = vld [vmem:[#allocation6 + $0xd8] sm:$0xf0] }
 0x1ee   :  { %407 = vmatmul.bf16.vlgmr.msra.gmra.mxu3 %v330_v61  ;;  %v3561_v61 = vld [vmem:[#allocation6 + $0x1e4] sm:$0xf]  ;;  %v2903_v7 = vld [vmem:[#allocation6 + $0x80] sm:$0xf]  ;;  %v3519_v8 = vld [vmem:[#allocation6 + $0x8c] sm:$0xf0] }
 0x1ef   :  { %v2828_v2 = vor.u32 %v3561_v61, %v2825_v63  ;;  %867 = vmatpush.bf16.msrb.mxu3 %v2824_v62  ;;  %910 = vmatpush.bf16.msrb.mxu2 %v2820_v20  ;;  %v2769_v61 = vld [vmem:[#allocation6 + $0x178] sm:$0xf0]  ;;  %v2743_v63 = vld [vmem:[#allocation6 + $0x140] sm:$0xf]  ;;  %v3538_v20 = vld [vmem:[#allocation6 + $0x12c] sm:$0xf] }
 0x1f0   :  { %v2772_v62 = vor.u32 %v3546_v60, %v2769_v61  ;;  %v2744_v1 = vor.u32 %v3543_v0, %v2743_v63  ;;  %v3523_v60 = vld [vmem:[#allocation6 + $0xac] sm:$0xf0]  ;;  %v3521_v61 = vld [vmem:[#allocation6 + $0xa4] sm:$0xf]  ;;  %v2921_v63 = vld [vmem:[#allocation6 + $0xb0] sm:$0xf0] }
 0x1f1   :  { %881 = vmatpush.bf16.msra.mxu0 %v2828_v2  ;;  %v3541_v2 = vld [vmem:[#allocation6 + $0x144] sm:$0xf]  ;;  %v2927_v0 = vld [vmem:[#allocation6 + $0xa8] sm:$0xf] }
 0x1f2   :  { %v2748_v5 = vor.u32 %v3541_v2, %v2745_v3  ;;  %v2924_v2 = vor.u32 %v3521_v61, %v2921_v63  ;;  %v2841_v61 = vld [vmem:[#allocation6 + $0x10] sm:$0xf0] }
 0x1f3   :  { %868 = vmatpush.bf16.msrb.mxu3 %v2808_v11  ;;  %v2727_v11 = vld [vmem:[#allocation6 + $0x120] sm:$0xf] }
 0x1f5   :  { %882 = vmatpush.bf16.msra.mxu0 %v2812_v12  ;;  %v3539_v12 = vld [vmem:[#allocation6 + $0x12c] sm:$0xf0] }
 0x1f6   :  { %v2728_v14 = vor.u32 %v3539_v12, %v2727_v11  ;;  %v2905_v11 = vld [vmem:[#allocation6 + $0x90] sm:$0xf0]  ;;  %v2911_v12 = vld [vmem:[#allocation6 + $0x88] sm:$0xf] }
 0x271   :  { %v408_v21 = vpop.f32.mrf.mxu3 }
 0x272   :  { %v409_v23 = vadd.f32 %v3697_v22, %v408_v21  ;;  %v3553_v21 = vld [vmem:[#allocation6 + $0x1a4] sm:$0xf] }
 0x274   :  { %3716 = vtanh.f32 %v409_v23  ;;  %v2799_v23 = vld [vmem:[#allocation6 + $0x1a8] sm:$0xf] }
 0x279   :  { %v410_v24 = vpop.f32.mrf.mxu3 }
 0x27a   :  { %v411_v25 = vadd.f32 %v3697_v22, %v410_v24  ;;  %v3717_v26 = vpop.eup %3716  ;;  %v2793_v22 = vld [vmem:[#allocation6 + $0x1b0] sm:$0xf0]  ;;  %v2792_v24 = vor.u32 %v3555_v19, %v2791_v18  ;;  %v2732_v18 = vor.u32 %v3537_v13, %v2729_v15  ;;  %v2736_v19 = vor.u32 %v3540_v17, %v2735_v16  ;;  %v3520_v13 = vld [vmem:[#allocation6 + $0x94] sm:$0xf0]  ;;  %v3518_v16 = vld [vmem:[#allocation6 + $0x8c] sm:$0xf] }
 0x27b   :  { %v2912_v15 = vor.u32 %v3520_v13, %v2911_v12  ;;  %v2913_v17 = vld [vmem:[#allocation6 + $0x98] sm:$0xf0] }
 0x27c   :  { %3718 = vtanh.f32 %v411_v25  ;;  %v3556_v25 = vld [vmem:[#allocation6 + $0x1b4] sm:$0xf0]  ;;  %869 = vmatpush.bf16.msrb.mxu3 %v2792_v24  ;;  %v3535_v24 = vld [vmem:[#allocation6 + $0x10c] sm:$0xf0] }
 0x27d   :  { %v2800_v29 = vor.u32 %v3556_v25, %v2799_v23  ;;  %v2711_v23 = vld [vmem:[#allocation6 + $0x100] sm:$0xf]  ;;  %v3533_v25 = vld [vmem:[#allocation6 + $0x104] sm:$0xf] }
 0x27f   :  { %897 = vmatpush.bf16.msrb.mxu1 %v2800_v29  ;;  %v3536_v29 = vld [vmem:[#allocation6 + $0x114] sm:$0xf0] }
 0x280   :  { %870 = vmatpush.bf16.msrb.mxu3 %v2776_v39  ;;  %v2952_v39 = vor.u32 %v3531_v36, %v2951_v34  ;;  %v3509_v34 = vld [vmem:[#allocation6 + $0x44] sm:$0xf] }
 0x282   :  { %v3719_v27 = vpop.eup %3718 }
 0x283   :  { %v415_v28 = vpack.c.bf16 %v3719_v27, %v3717_v26  ;;  %v3554_v26 = vld [vmem:[#allocation6 + $0x1ac] sm:$0xf]  ;;  %v2801_v27 = vld [vmem:[#allocation6 + $0x1b8] sm:$0xf0]  ;;  %898 = vmatpush.bf16.msrb.mxu1 %v2784_v42  ;;  %v3532_v42 = vld [vmem:[#allocation6 + $0xf4] sm:$0xf0] }
 0x284   :  { %v2804_v33 = vor.u32 %v3554_v26, %v2801_v27  ;;  %871 = vmatpush.bf16.msrb.mxu3 %v2760_v54  ;;  %v2712_v26 = vor.u32 %v3535_v24, %v2711_v23  ;;  %v2713_v27 = vld [vmem:[#allocation6 + $0x110] sm:$0xf0]  ;;  %v3528_v54 = vld [vmem:[#allocation6 + $0xd4] sm:$0xf0]  ;;  %v2895_v24 = vld [vmem:[#allocation6 + $0x68] sm:$0xf] }
 0x285   :  { %492 = vmatmul.bf16.vlgmr.msrb.gmra.mxu0 %v415_v28  ;;  %v2796_v28 = vor.u32 %v3553_v21, %v2793_v22  ;;  %v2737_v21 = vld [vmem:[#allocation6 + $0x138] sm:$0xf0]  ;;  %v2716_v30 = vor.u32 %v3533_v25, %v2713_v27  ;;  %v2944_v57 = vor.u32 %v3528_v54, %v2943_v52  ;;  %v2889_v23 = vld [vmem:[#allocation6 + $0x70] sm:$0xf0]  ;;  %v3516_v25 = vld [vmem:[#allocation6 + $0x74] sm:$0xf0] }
 0x286   :  { %911 = vmatpush.bf16.msrb.mxu2 %v2804_v33  ;;  %v2740_v22 = vor.u32 %v3538_v20, %v2737_v21  ;;  %v2721_v33 = vld [vmem:[#allocation6 + $0x118] sm:$0xf0]  ;;  %v3515_v20 = vld [vmem:[#allocation6 + $0x6c] sm:$0xf0]  ;;  %v3513_v21 = vld [vmem:[#allocation6 + $0x64] sm:$0xf]  ;;  %v2896_v27 = vor.u32 %v3516_v25, %v2895_v24 }
 0x287   :  { %883 = vmatpush.bf16.msra.mxu0 %v2796_v28  ;;  %899 = vmatpush.bf16.msrb.mxu1 %v2768_v59  ;;  %v2719_v28 = vld [vmem:[#allocation6 + $0x108] sm:$0xf]  ;;  %v2724_v35 = vor.u32 %v3534_v32, %v2721_v33  ;;  %v2919_v59 = vld [vmem:[#allocation6 + $0xa0] sm:$0xf]  ;;  %v3511_v33 = vld [vmem:[#allocation6 + $0x4c] sm:$0xf0] }
 0x288   :  { %872 = vmatpush.bf16.msrb.mxu3 %v2744_v1  ;;  %v2720_v31 = vor.u32 %v3536_v29, %v2719_v28  ;;  %v3524_v1 = vld [vmem:[#allocation6 + $0xb4] sm:$0xf0]  ;;  %v3514_v28 = vld [vmem:[#allocation6 + $0x6c] sm:$0xf]  ;;  %v2897_v29 = vld [vmem:[#allocation6 + $0x78] sm:$0xf0] }
 0x289   :  { %v2928_v3 = vor.u32 %v3524_v1, %v2927_v0  ;;  %v2900_v32 = vor.u32 %v3514_v28, %v2897_v29  ;;  %v2865_v52 = vld [vmem:[#allocation6 + $0x38] sm:$0xf0]  ;;  %v2847_v0 = vld [vmem:[#allocation6 + $0x8] sm:$0xf]  ;;  %v3504_v1 = vld [vmem:[#allocation6 + $0x14] sm:$0xf0] }
 0x28a   :  { %912 = vmatpush.bf16.msrb.mxu2 %v2788_v43  ;;  %v3530_v43 = vld [vmem:[#allocation6 + $0xec] sm:$0xf]  ;;  %v3595_v28 = vld [vmem:[#allocation4 + $0x174] sm:$0xf] }
 0x28b   :  { %884 = vmatpush.bf16.msra.mxu0 %v2780_v41  ;;  %900 = vmatpush.bf16.msrb.mxu1 %v2752_v9  ;;  %v2959_v41 = vld [vmem:[#allocation6 + $0xe8] sm:$0xf]  ;;  %v3517_v9 = vld [vmem:[#allocation6 + $0x84] sm:$0xf] }
 0x28c   :  { %873 = vmatpush.bf16.msrb.mxu3 %v2728_v14  ;;  %v2908_v14 = vor.u32 %v3517_v9, %v2905_v11 }
 0x28e   :  { %913 = vmatpush.bf16.msrb.mxu2 %v2772_v62  ;;  %v2920_v62 = vor.u32 %v3523_v60, %v2919_v59  ;;  %v3503_v59 = vld [vmem:[#allocation6 + $0xc] sm:$0xf0]  ;;  %v3501_v60 = vld [vmem:[#allocation6 + $0x4] sm:$0xf] }
 0x28f   :  { %885 = vmatpush.bf16.msra.mxu0 %v2764_v58  ;;  %901 = vmatpush.bf16.msrb.mxu1 %v2736_v19  ;;  %v2948_v58 = vor.u32 %v3526_v55, %v2945_v56  ;;  %v2887_v19 = vld [vmem:[#allocation6 + $0x60] sm:$0xf] }
 0x290   :  { %874 = vmatpush.bf16.msrb.mxu3 %v2712_v26  ;;  %v2892_v26 = vor.u32 %v3513_v21, %v2889_v23  ;;  %v2839_v56 = vld [vmem:[#allocation6] sm:$0xf] }
 0x292   :  { %914 = vmatpush.bf16.msrb.mxu2 %v2756_v10  ;;  %v2904_v10 = vor.u32 %v3519_v8, %v2903_v7  ;;  %v2844_v7 = vor.u32 %v3501_v60, %v2841_v61  ;;  %v2848_v8 = vor.u32 %v3504_v1, %v2847_v0  ;;  %v3073_v60 = vld [vmem:[#allocation4 + $0xd8] sm:$0xf0]  ;;  %v3589_v0 = vld [vmem:[#allocation4 + $0x144] sm:$0xf] }
 0x293   :  { %886 = vmatpush.bf16.msra.mxu0 %v2748_v5  ;;  %902 = vmatpush.bf16.msrb.mxu1 %v2720_v31  ;;  %v2929_v5 = vld [vmem:[#allocation6 + $0xb8] sm:$0xf0] }
 0x294   :  { %1087 = vmatpush.bf16.msra.mxu3 %v2952_v39  ;;  %v2932_v6 = vor.u32 %v3522_v4, %v2929_v5  ;;  %v3512_v39 = vld [vmem:[#allocation6 + $0x54] sm:$0xf0] }
 0x296   :  { %915 = vmatpush.bf16.msrb.mxu2 %v2740_v22  ;;  %v2888_v22 = vor.u32 %v3515_v20, %v2887_v19 }
 0x297   :  { %887 = vmatpush.bf16.msra.mxu0 %v2732_v18  ;;  %v2916_v18 = vor.u32 %v3518_v16, %v2913_v17 }
 0x29a   :  { %916 = vmatpush.bf16.msrb.mxu2 %v2724_v35  ;;  %v2873_v35 = vld [vmem:[#allocation6 + $0x50] sm:$0xf0] }
 0x29b   :  { %888 = vmatpush.bf16.msra.mxu0 %v2716_v30  ;;  %v2871_v30 = vld [vmem:[#allocation6 + $0x40] sm:$0xf] }
 0x29c   :  { %v2872_v36 = vor.u32 %v3511_v33, %v2871_v30  ;;  %v3025_v30 = vld [vmem:[#allocation4 + $0x178] sm:$0xf0] }
 0x29d   :  { %v3028_v33 = vor.u32 %v3595_v28, %v3025_v30  ;;  %v3569_v30 = vld [vmem:[#allocation4 + $0xa4] sm:$0xf] }
 0x302   :  { %v493_v40 = vpop.f32.mrf.mxu0 }
 0x303   :  { %v494_v45 = vadd.f32 %v3698_v44, %v493_v40  ;;  %v2956_v40 = vor.u32 %v3529_v37, %v2953_v38  ;;  %v2876_v37 = vor.u32 %v3509_v34, %v2873_v35  ;;  %v2879_v38 = vld [vmem:[#allocation6 + $0x48] sm:$0xf]  ;;  %v3579_v35 = vld [vmem:[#allocation4 + $0xf4] sm:$0xf] }
 0x305   :  { %3720 = vtanh.f32 %v494_v45  ;;  %v2961_v45 = vld [vmem:[#allocation6 + $0xf8] sm:$0xf0]  ;;  %1101 = vmatpush.bf16.msrb.mxu0 %v2956_v40  ;;  %v3510_v40 = vld [vmem:[#allocation6 + $0x4c] sm:$0xf] }
 0x30a   :  { %v495_v46 = vpop.f32.mrf.mxu0 }
 0x30b   :  { %v496_v47 = vadd.f32 %v3698_v44, %v495_v46  ;;  %v3721_v48 = vpop.eup %3720  ;;  %v2960_v44 = vor.u32 %v3532_v42, %v2959_v41  ;;  %v2935_v46 = vld [vmem:[#allocation6 + $0xc0] sm:$0xf]  ;;  %v517_v41 = vld [vmem:[%s4025_s2 + $0x5] sm:$0x3]  ;;  %v2880_v42 = vor.u32 %v3512_v39, %v2879_v38  ;;  %v3594_v39 = vld [vmem:[#allocation4 + $0x164] sm:$0xf0] }
 0x30c   :  { %v3015_v38 = vld [vmem:[#allocation4 + $0x160] sm:$0xf] }
 0x30d   :  { %3722 = vtanh.f32 %v496_v47  ;;  %v3527_v47 = vld [vmem:[#allocation6 + $0xcc] sm:$0xf0] }
 0x313   :  { %v3723_v49 = vpop.eup %3722 }
 0x314   :  { %v500_v50 = vpack.c.bf16 %v3723_v49, %v3721_v48  ;;  %v2964_v48 = vor.u32 %v3530_v43, %v2961_v45  ;;  %v2936_v49 = vor.u32 %v3527_v47, %v2935_v46  ;;  %v2881_v43 = vld [vmem:[#allocation6 + $0x58] sm:$0xf0]  ;;  %v3507_v45 = vld [vmem:[#allocation6 + $0x2c] sm:$0xf0]  ;;  %v3505_v47 = vld [vmem:[#allocation6 + $0x24] sm:$0xf] }
 0x315   :  { %v2884_v46 = vor.u32 %v3510_v40, %v2881_v43  ;;  %v3593_v40 = vld [vmem:[#allocation4 + $0x164] sm:$0xf]  ;;  %v3079_v43 = vld [vmem:[#allocation4 + $0xe0] sm:$0xf] }
 0x316   :  { %611 = vmatmul.bf16.vlgmr.msra.gmra.mxu1 %v500_v50  ;;  %625 = vmatmul.bf16.vlgmr.msra.gmra.mxu2 %v500_v50  ;;  %v3525_v50 = vld [vmem:[#allocation6 + $0xc4] sm:$0xf] }
 0x317   :  { %1115 = vmatpush.bf16.msra.mxu1 %v2960_v44  ;;  %v2940_v53 = vor.u32 %v3525_v50, %v2937_v51  ;;  %1129 = vmatpush.bf16.msra.mxu2 %v2964_v48  ;;  %v2855_v44 = vld [vmem:[#allocation6 + $0x20] sm:$0xf]  ;;  %v2857_v48 = vld [vmem:[#allocation6 + $0x30] sm:$0xf0]  ;;  %v3508_v50 = vld [vmem:[#allocation6 + $0x34] sm:$0xf0] }
 0x318   :  { %1088 = vmatpush.bf16.msra.mxu3 %v2936_v49  ;;  %v2863_v49 = vld [vmem:[#allocation6 + $0x28] sm:$0xf]  ;;  %v3506_v51 = vld [vmem:[#allocation6 + $0x2c] sm:$0xf]  ;;  %v2856_v54 = vor.u32 %v3507_v45, %v2855_v44  ;;  %v2860_v55 = vor.u32 %v3505_v47, %v2857_v48  ;;  %v3577_v47 = vld [vmem:[#allocation4 + $0xe4] sm:$0xf] }
 0x319   :  { %1102 = vmatpush.bf16.msrb.mxu0 %v2940_v53  ;;  %v520_v53 = vperm.slane %v517_v41, 1  ;;  %v2868_v63 = vor.u32 %v3506_v51, %v2865_v52  ;;  %v3578_v44 = vld [vmem:[#allocation4 + $0xe4] sm:$0xf0]  ;;  %v3081_v48 = vld [vmem:[#allocation4 + $0xe8] sm:$0xf0] }
 0x31a   :  { %v3592_v51 = vld [vmem:[#allocation4 + $0x154] sm:$0xf0]  ;;  %v3591_v52 = vld [vmem:[#allocation4 + $0x154] sm:$0xf] }
 0x31b   :  { %1116 = vmatpush.bf16.msra.mxu1 %v2944_v57  ;;  %1130 = vmatpush.bf16.msra.mxu2 %v2948_v58  ;;  %v2864_v58 = vor.u32 %v3508_v50, %v2863_v49  ;;  %v3084_v49 = vor.u32 %v3577_v47, %v3081_v48  ;;  %v3007_v50 = vld [vmem:[#allocation4 + $0x150] sm:$0xf]  ;;  %v3582_v47 = vld [vmem:[#allocation4 + $0x104] sm:$0xf0]  ;;  %v3581_v48 = vld [vmem:[#allocation4 + $0x104] sm:$0xf] }
 0x31c   :  { %1089 = vmatpush.bf16.msra.mxu3 %v2920_v62  ;;  %v519_v62 = vperm.slane %v517_v41, 0  ;;  %v3016_v41 = vor.u32 %v3594_v39, %v3015_v38  ;;  %v2977_v38 = vld [vmem:[#allocation4 + $0x118] sm:$0xf0]  ;;  %v3039_v39 = vld [vmem:[#allocation4 + $0x90] sm:$0xf] }
 0x31d   :  { %1103 = vmatpush.bf16.msrb.mxu0 %v2924_v2  ;;  %v3502_v2 = vld [vmem:[#allocation6 + $0xc] sm:$0xf] }
 0x31f   :  { %1117 = vmatpush.bf16.msra.mxu1 %v2928_v3  ;;  %1131 = vmatpush.bf16.msra.mxu2 %v2932_v6  ;;  %v2849_v3 = vld [vmem:[#allocation6 + $0x18] sm:$0xf0]  ;;  %v2840_v6 = vor.u32 %v3503_v59, %v2839_v56  ;;  %v3576_v56 = vld [vmem:[#allocation4 + $0xd4] sm:$0xf0]  ;;  %v3575_v59 = vld [vmem:[#allocation4 + $0xd4] sm:$0xf] }
 0x320   :  { %1090 = vmatpush.bf16.msra.mxu3 %v2904_v10  ;;  %v2852_v10 = vor.u32 %v3502_v2, %v2849_v3  ;;  %v3076_v61 = vor.u32 %v3575_v59, %v3073_v60  ;;  %v3001_v2 = vld [vmem:[#allocation4 + $0x148] sm:$0xf0]  ;;  %v3063_v3 = vld [vmem:[#allocation4 + $0xc0] sm:$0xf]  ;;  %v3612_v60 = vld [vmem:[#allocation4 + $0x1f4] sm:$0xf0] }
 0x321   :  { %1104 = vmatpush.bf16.msrb.mxu0 %v2908_v14 }
 0x323   :  { %1118 = vmatpush.bf16.msra.mxu1 %v2912_v15  ;;  %1132 = vmatpush.bf16.msra.mxu2 %v2916_v18 }
 0x324   :  { %1091 = vmatpush.bf16.msra.mxu3 %v2888_v22 }
 0x325   :  { %1105 = vmatpush.bf16.msrb.mxu0 %v2892_v26  ;;  %v3023_v26 = vld [vmem:[#allocation4 + $0x170] sm:$0xf] }
 0x327   :  { %1119 = vmatpush.bf16.msra.mxu1 %v2896_v27  ;;  %1133 = vmatpush.bf16.msra.mxu2 %v2900_v32  ;;  %v3596_v27 = vld [vmem:[#allocation4 + $0x174] sm:$0xf0] }
 0x328   :  { %1092 = vmatpush.bf16.msra.mxu3 %v2872_v36  ;;  %v3024_v29 = vor.u32 %v3596_v27, %v3023_v26  ;;  %v3580_v32 = vld [vmem:[#allocation4 + $0xf4] sm:$0xf0]  ;;  %v3089_v36 = vld [vmem:[#allocation4 + $0xf8] sm:$0xf0]  ;;  %v2985_v26 = vld [vmem:[#allocation4 + $0x128] sm:$0xf0] }
 0x329   :  { %1106 = vmatpush.bf16.msrb.mxu0 %v2876_v37  ;;  %v3092_v37 = vor.u32 %v3579_v35, %v3089_v36  ;;  %v3047_v27 = vld [vmem:[#allocation4 + $0xa0] sm:$0xf]  ;;  %v3584_v35 = vld [vmem:[#allocation4 + $0x114] sm:$0xf0]  ;;  %v3583_v36 = vld [vmem:[#allocation4 + $0x114] sm:$0xf] }
 0x32b   :  { %1120 = vmatpush.bf16.msra.mxu1 %v2880_v42  ;;  %1134 = vmatpush.bf16.msra.mxu2 %v2884_v46  ;;  %v3017_v42 = vld [vmem:[#allocation4 + $0x168] sm:$0xf0]  ;;  %v3080_v46 = vor.u32 %v3578_v44, %v3079_v43  ;;  %v3567_v43 = vld [vmem:[#allocation4 + $0x94] sm:$0xf]  ;;  %v3041_v44 = vld [vmem:[#allocation4 + $0x98] sm:$0xf0] }
 0x32c   :  { %1093 = vmatpush.bf16.msra.mxu3 %v2856_v54  ;;  %v3020_v45 = vor.u32 %v3593_v40, %v3017_v42  ;;  %v3009_v54 = vld [vmem:[#allocation4 + $0x158] sm:$0xf0]  ;;  %v3568_v40 = vld [vmem:[#allocation4 + $0x94] sm:$0xf0] }
 0x32d   :  { %1107 = vmatpush.bf16.msrb.mxu0 %v2860_v55  ;;  %v3071_v55 = vld [vmem:[#allocation4 + $0xd0] sm:$0xf]  ;;  %v3040_v42 = vor.u32 %v3568_v40, %v3039_v39  ;;  %v3129_v39 = vld [vmem:[#allocation4 + $0x1c8] sm:$0xf0]  ;;  %v3191_v40 = vld [vmem:[#allocation4 + $0x240] sm:$0xf] }
 0x32f   :  { %1121 = vmatpush.bf16.msra.mxu1 %v2864_v58  ;;  %1135 = vmatpush.bf16.msra.mxu2 %v2868_v63  ;;  %v3072_v58 = vor.u32 %v3576_v56, %v3071_v55  ;;  %v3590_v63 = vld [vmem:[#allocation4 + $0x144] sm:$0xf0]  ;;  %v3565_v56 = vld [vmem:[#allocation4 + $0x84] sm:$0xf] }
 0x330   :  { %1094 = vmatpush.bf16.msra.mxu3 %v2840_v6 }
 0x331   :  { %1108 = vmatpush.bf16.msrb.mxu0 %v2844_v7  ;;  %v3573_v7 = vld [vmem:[#allocation4 + $0xc4] sm:$0xf] }
 0x333   :  { %1122 = vmatpush.bf16.msra.mxu1 %v2848_v8  ;;  %1136 = vmatpush.bf16.msra.mxu2 %v2852_v10  ;;  %v3065_v8 = vld [vmem:[#allocation4 + $0xc8] sm:$0xf0]  ;;  %v2991_v10 = vld [vmem:[#allocation4 + $0x130] sm:$0xf] }
 0x393   :  { %v612_v31 = vpop.f32.mrf.mxu1 }
 0x394   :  { %v613_v9 = vadd.f32 %v612_v31, %v519_v62  ;;  %v3087_v31 = vld [vmem:[#allocation4 + $0xf0] sm:$0xf] }
 0x395   :  { %v3088_v34 = vor.u32 %v3580_v32, %v3087_v31  ;;  %v3049_v32 = vld [vmem:[#allocation4 + $0xa8] sm:$0xf0] }
 0x399   :  { %v626_v57 = vpop.f32.mrf.mxu2 }
 0x39a   :  { %v627_v4 = vadd.f32 %v626_v57, %v520_v53  ;;  %v3012_v57 = vor.u32 %v3591_v52, %v3009_v54  ;;  %v3566_v52 = vld [vmem:[#allocation4 + $0x84] sm:$0xf0] }
 0x39b   :  { %v614_v5 = vpop.f32.mrf.mxu1 }
 0x39c   :  { %v615_v11 = vadd.f32 %v614_v5, %v519_v62  ;;  %3724 = vtanh.f32 %v627_v4  ;;  %v2999_v62 = vld [vmem:[#allocation4 + $0x140] sm:$0xf]  ;;  %v3574_v4 = vld [vmem:[#allocation4 + $0xc4] sm:$0xf0]  ;;  %v3004_v5 = vor.u32 %v3589_v0, %v3001_v2  ;;  %v3628_v2 = vld [vmem:[#allocation4 + $0x274] sm:$0xf0] }
 0x39d   :  { %3726 = vtanh.f32 %v613_v9  ;;  %v3000_v1 = vor.u32 %v3590_v63, %v2999_v62  ;;  %v3064_v6 = vor.u32 %v3574_v4, %v3063_v3  ;;  %v3068_v9 = vor.u32 %v3573_v7, %v3065_v8  ;;  %v3153_v62 = vld [vmem:[#allocation4 + $0x1f8] sm:$0xf0]  ;;  %v3627_v3 = vld [vmem:[#allocation4 + $0x274] sm:$0xf]  ;;  %v3610_v7 = vld [vmem:[#allocation4 + $0x1e4] sm:$0xf0] }
 0x39e   :  { %3728 = vtanh.f32 %v615_v11  ;;  %v3588_v11 = vld [vmem:[#allocation4 + $0x134] sm:$0xf0] }
 0x3a1   :  { %v628_v12 = vpop.f32.mrf.mxu2 }
 0x3a2   :  { %v629_v13 = vadd.f32 %v628_v12, %v520_v53  ;;  %v3725_v14 = vpop.eup %3724  ;;  %v3008_v53 = vor.u32 %v3592_v51, %v3007_v50  ;;  %v2992_v12 = vor.u32 %v3588_v11, %v2991_v10  ;;  %v2969_v50 = vld [vmem:[#allocation4 + $0x108] sm:$0xf0]  ;;  %v3031_v51 = vld [vmem:[#allocation4 + $0x80] sm:$0xf]  ;;  %v3609_v10 = vld [vmem:[#allocation4 + $0x1e4] sm:$0xf] }
 0x3a3   :  { %v3727_v15 = vpop.eup %3726  ;;  %v2972_v54 = vor.u32 %v3581_v48, %v2969_v50  ;;  %v3032_v55 = vor.u32 %v3566_v52, %v3031_v51  ;;  %v3145_v11 = vld [vmem:[#allocation4 + $0x1e8] sm:$0xf0]  ;;  %v3604_v50 = vld [vmem:[#allocation4 + $0x1b4] sm:$0xf0]  ;;  %v3603_v51 = vld [vmem:[#allocation4 + $0x1b4] sm:$0xf] }
 0x3a4   :  { %3730 = vtanh.f32 %v629_v13  ;;  %v3729_v16 = vpop.eup %3728  ;;  %v635_v17 = vpack.c.bf16 %v3725_v14, %v3727_v15  ;;  %v3587_v13 = vld [vmem:[#allocation4 + $0x134] sm:$0xf]  ;;  %v2993_v14 = vld [vmem:[#allocation4 + $0x138] sm:$0xf0]  ;;  %v3055_v15 = vld [vmem:[#allocation4 + $0xb0] sm:$0xf] }
 0x3a6   :  { %v703_v20 = vunpack.c.h.b16 %v635_v17  ;;  %v923_v24 = vunpack.c.l.b16 %v635_v17  ;;  %v3572_v17 = vld [vmem:[#allocation4 + $0xb4] sm:$0xf0] }
 0x3aa   :  { %v3731_v18 = vpop.eup %3730 }
 0x3ab   :  { %v636_v19 = vpack.c.bf16 %v3731_v18, %v3729_v16  ;;  %v2996_v16 = vor.u32 %v3587_v13, %v2993_v14  ;;  %v3571_v18 = vld [vmem:[#allocation4 + $0xb4] sm:$0xf]  ;;  %v3148_v13 = vor.u32 %v3609_v10, %v3145_v11  ;;  %v3626_v14 = vld [vmem:[#allocation4 + $0x264] sm:$0xf0] }
 0x3ad   :  { %v704_v21 = vunpack.c.h.b16 %v636_v19  ;;  %v924_v23 = vunpack.c.l.b16 %v636_v19  ;;  %v3057_v19 = vld [vmem:[#allocation4 + $0xb8] sm:$0xf0] }
 0x3af   :  { %v705_v22 = vpack.c.b16 %v704_v21, %v703_v20  ;;  %v925_v25 = vpack.c.b16 %v924_v23, %v923_v24  ;;  %v3056_v20 = vor.u32 %v3572_v17, %v3055_v15  ;;  %v3060_v21 = vor.u32 %v3571_v18, %v3057_v19  ;;  %v3586_v23 = vld [vmem:[#allocation4 + $0x124] sm:$0xf0]  ;;  %v3585_v24 = vld [vmem:[#allocation4 + $0x124] sm:$0xf] }
 0x3b0   :  { %v2988_v28 = vor.u32 %v3585_v24, %v2985_v26  ;;  %v3625_v15 = vld [vmem:[#allocation4 + $0x264] sm:$0xf]  ;;  %v3607_v24 = vld [vmem:[#allocation4 + $0x1d4] sm:$0xf] }
 0x3b1   :  { %875 = vmatmul.bf16.vlgmr.msrb.gmra.mxu3 %v705_v22  ;;  %889 = vmatmul.bf16.vlgmr.msra.gmra.mxu0 %v705_v22 }
 0x3b2   :  { %903 = vmatmul.bf16.vlgmr.msrb.gmra.mxu1 %v705_v22  ;;  %917 = vmatmul.bf16.vlgmr.msrb.gmra.mxu2 %v705_v22  ;;  %v2983_v22 = vld [vmem:[#allocation4 + $0x120] sm:$0xf] }
 0x3b3   :  { %1291 = vmatpush.bf16.msrb.mxu3 %v3024_v29  ;;  %1305 = vmatpush.bf16.msra.mxu0 %v3028_v33  ;;  %v3570_v29 = vld [vmem:[#allocation4 + $0xa4] sm:$0xf0]  ;;  %v3052_v33 = vor.u32 %v3569_v30, %v3049_v32  ;;  %v3623_v32 = vld [vmem:[#allocation4 + $0x254] sm:$0xf] }
 0x3b4   :  { %1403 = vmatpush.bf16.msrb.mxu1 %v3088_v34  ;;  %1417 = vmatpush.bf16.msrb.mxu2 %v3092_v37  ;;  %v3048_v31 = vor.u32 %v3570_v29, %v3047_v27  ;;  %v2975_v34 = vld [vmem:[#allocation4 + $0x110] sm:$0xf]  ;;  %v3137_v27 = vld [vmem:[#allocation4 + $0x1d8] sm:$0xf0]  ;;  %v3624_v29 = vld [vmem:[#allocation4 + $0x254] sm:$0xf0] }
 0x3b5   :  { %v2976_v37 = vor.u32 %v3584_v35, %v2975_v34  ;;  %v3140_v30 = vor.u32 %v3607_v24, %v3137_v27  ;;  %v3127_v35 = vld [vmem:[#allocation4 + $0x1c0] sm:$0xf]  ;;  %v3169_v27 = vld [vmem:[#allocation4 + $0x218] sm:$0xf0] }
 0x3b7   :  { %1292 = vmatpush.bf16.msrb.mxu3 %v3016_v41  ;;  %1306 = vmatpush.bf16.msra.mxu0 %v3020_v45  ;;  %v2980_v41 = vor.u32 %v3583_v36, %v2977_v38  ;;  %v3044_v45 = vor.u32 %v3567_v43, %v3041_v44  ;;  %v3606_v36 = vld [vmem:[#allocation4 + $0x1c4] sm:$0xf0]  ;;  %v3621_v44 = vld [vmem:[#allocation4 + $0x244] sm:$0xf] }
 0x3b8   :  { %1404 = vmatpush.bf16.msrb.mxu1 %v3080_v46  ;;  %1418 = vmatpush.bf16.msrb.mxu2 %v3084_v49  ;;  %v2967_v46 = vld [vmem:[#allocation4 + $0x100] sm:$0xf]  ;;  %v3128_v38 = vor.u32 %v3606_v36, %v3127_v35  ;;  %v3598_v36 = vld [vmem:[#allocation4 + $0x184] sm:$0xf0] }
 0x3b9   :  { %v2968_v49 = vor.u32 %v3582_v47, %v2967_v46  ;;  %v3095_v35 = vld [vmem:[#allocation4 + $0x180] sm:$0xf] }
 0x3bb   :  { %1293 = vmatpush.bf16.msrb.mxu3 %v3008_v53  ;;  %1307 = vmatpush.bf16.msra.mxu0 %v3012_v57  ;;  %v3033_v57 = vld [vmem:[#allocation4 + $0x88] sm:$0xf0] }
 0x3bc   :  { %1405 = vmatpush.bf16.msrb.mxu1 %v3072_v58  ;;  %1419 = vmatpush.bf16.msrb.mxu2 %v3076_v61  ;;  %v3151_v58 = vld [vmem:[#allocation4 + $0x1f0] sm:$0xf]  ;;  %v3036_v59 = vor.u32 %v3565_v56, %v3033_v57  ;;  %v3611_v61 = vld [vmem:[#allocation4 + $0x1f4] sm:$0xf]  ;;  %v3121_v56 = vld [vmem:[#allocation4 + $0x1b8] sm:$0xf0] }
 0x3bd   :  { %v3152_v63 = vor.u32 %v3612_v60, %v3151_v58  ;;  %v3156_v0 = vor.u32 %v3611_v61, %v3153_v62  ;;  %v3183_v57 = vld [vmem:[#allocation4 + $0x230] sm:$0xf]  ;;  %v3620_v58 = vld [vmem:[#allocation4 + $0x234] sm:$0xf0]  ;;  %v3619_v61 = vld [vmem:[#allocation4 + $0x234] sm:$0xf] }
 0x3be   :  { %v3184_v60 = vor.u32 %v3620_v58, %v3183_v57  ;;  %v3185_v62 = vld [vmem:[#allocation4 + $0x238] sm:$0xf0] }
 0x3bf   :  { %1294 = vmatpush.bf16.msrb.mxu3 %v3000_v1  ;;  %1308 = vmatpush.bf16.msra.mxu0 %v3004_v5  ;;  %v3215_v1 = vld [vmem:[#allocation4 + $0x270] sm:$0xf]  ;;  %v3217_v5 = vld [vmem:[#allocation4 + $0x278] sm:$0xf0] }
 0x3c0   :  { %1406 = vmatpush.bf16.msrb.mxu1 %v3064_v6  ;;  %1420 = vmatpush.bf16.msrb.mxu2 %v3068_v9  ;;  %v3216_v4 = vor.u32 %v3628_v2, %v3215_v1  ;;  %v3143_v6 = vld [vmem:[#allocation4 + $0x1e0] sm:$0xf]  ;;  %v3220_v8 = vor.u32 %v3627_v3, %v3217_v5  ;;  %v3602_v1 = vld [vmem:[#allocation4 + $0x1a4] sm:$0xf0]  ;;  %v3601_v2 = vld [vmem:[#allocation4 + $0x1a4] sm:$0xf] }
 0x3c1   :  { %1095 = vmatmul.bf16.vlgmr.msra.gmra.mxu3 %v925_v25  ;;  %1109 = vmatmul.bf16.vlgmr.msrb.gmra.mxu0 %v925_v25  ;;  %v3144_v9 = vor.u32 %v3610_v7, %v3143_v6  ;;  %v3113_v3 = vld [vmem:[#allocation4 + $0x1a8] sm:$0xf0]  ;;  %v3618_v5 = vld [vmem:[#allocation4 + $0x224] sm:$0xf0]  ;;  %v3617_v6 = vld [vmem:[#allocation4 + $0x224] sm:$0xf] }
 0x3c2   :  { %1123 = vmatmul.bf16.vlgmr.msra.gmra.mxu1 %v925_v25  ;;  %1137 = vmatmul.bf16.vlgmr.msra.gmra.mxu2 %v925_v25  ;;  %v2984_v25 = vor.u32 %v3586_v23, %v2983_v22  ;;  %v3135_v22 = vld [vmem:[#allocation4 + $0x1d0] sm:$0xf]  ;;  %v3608_v23 = vld [vmem:[#allocation4 + $0x1d4] sm:$0xf0]  ;;  %v3949_v7 = vld [vmem:[%s4025_s2 + $0x7] sm:$0xf]  ;;  %v3116_v10 = vor.u32 %v3601_v2, %v3113_v3 }
 0x3c3   :  { %1295 = vmatpush.bf16.msrb.mxu3 %v2992_v12  ;;  %1309 = vmatpush.bf16.msra.mxu0 %v2996_v16  ;;  %v3207_v12 = vld [vmem:[#allocation4 + $0x260] sm:$0xf]  ;;  %v3209_v16 = vld [vmem:[#allocation4 + $0x268] sm:$0xf0]  ;;  %v3136_v26 = vor.u32 %v3608_v23, %v3135_v22  ;;  %v3616_v22 = vld [vmem:[#allocation4 + $0x214] sm:$0xf0] }
 0x3c4   :  { %1407 = vmatpush.bf16.msrb.mxu1 %v3056_v20  ;;  %1421 = vmatpush.bf16.msrb.mxu2 %v3060_v21  ;;  %v3208_v19 = vor.u32 %v3626_v14, %v3207_v12  ;;  %v3212_v20 = vor.u32 %v3625_v15, %v3209_v16  ;;  %v3103_v12 = vld [vmem:[#allocation4 + $0x190] sm:$0xf]  ;;  %v3599_v14 = vld [vmem:[#allocation4 + $0x194] sm:$0xf]  ;;  %v1145_v24 = vperm.slane %v3949_v7, 0 }
 0x3c7   :  { %1296 = vmatpush.bf16.msrb.mxu3 %v2984_v25  ;;  %1310 = vmatpush.bf16.msra.mxu0 %v2988_v28  ;;  %v3199_v28 = vld [vmem:[#allocation4 + $0x250] sm:$0xf] }
 0x3c8   :  { %1408 = vmatpush.bf16.msrb.mxu1 %v3048_v31  ;;  %1422 = vmatpush.bf16.msrb.mxu2 %v3052_v33  ;;  %v3200_v31 = vor.u32 %v3624_v29, %v3199_v28  ;;  %v3201_v33 = vld [vmem:[#allocation4 + $0x258] sm:$0xf0]  ;;  %v1146_v28 = vperm.slane %v3949_v7, 1 }
 0x3c9   :  { %v3204_v34 = vor.u32 %v3623_v32, %v3201_v33 }
 0x3cb   :  { %1297 = vmatpush.bf16.msrb.mxu3 %v2976_v37  ;;  %1311 = vmatpush.bf16.msra.mxu0 %v2980_v41  ;;  %v3605_v37 = vld [vmem:[#allocation4 + $0x1c4] sm:$0xf]  ;;  %v3622_v41 = vld [vmem:[#allocation4 + $0x244] sm:$0xf0] }
 0x3cc   :  { %1409 = vmatpush.bf16.msrb.mxu1 %v3040_v42  ;;  %1423 = vmatpush.bf16.msrb.mxu2 %v3044_v45  ;;  %v3132_v42 = vor.u32 %v3605_v37, %v3129_v39  ;;  %v3192_v43 = vor.u32 %v3622_v41, %v3191_v40  ;;  %v3193_v45 = vld [vmem:[#allocation4 + $0x248] sm:$0xf0]  ;;  %v3597_v37 = vld [vmem:[#allocation4 + $0x184] sm:$0xf]  ;;  %v3159_v41 = vld [vmem:[#allocation4 + $0x200] sm:$0xf] }
 0x3cd   :  { %v3196_v47 = vor.u32 %v3621_v44, %v3193_v45  ;;  %v3097_v40 = vld [vmem:[#allocation4 + $0x188] sm:$0xf0]  ;;  %v3613_v44 = vld [vmem:[#allocation4 + $0x204] sm:$0xf] }
 0x3ce   :  { %v3161_v45 = vld [vmem:[#allocation4 + $0x208] sm:$0xf0] }
 0x3cf   :  { %1298 = vmatpush.bf16.msrb.mxu3 %v2968_v49  ;;  %1312 = vmatpush.bf16.msra.mxu0 %v2972_v54  ;;  %v3119_v49 = vld [vmem:[#allocation4 + $0x1b0] sm:$0xf] }
 0x3d0   :  { %1410 = vmatpush.bf16.msrb.mxu1 %v3032_v55  ;;  %1424 = vmatpush.bf16.msrb.mxu2 %v3036_v59  ;;  %v3120_v55 = vor.u32 %v3604_v50, %v3119_v49  ;;  %v3124_v59 = vor.u32 %v3603_v51, %v3121_v56  ;;  %v3100_v49 = vor.u32 %v3597_v37, %v3097_v40  ;;  %v3639_v40 = vld [vmem:[#allocation2 + $0x190] sm:$0xff] }
 0x3d3   :  { %1533 = vmatpush.bf16.msra.mxu3 %v3152_v63  ;;  %1547 = vmatpush.bf16.msrb.mxu0 %v3156_v0  ;;  %v3111_v63 = vld [vmem:[#allocation4 + $0x1a0] sm:$0xf]  ;;  %v3188_v0 = vor.u32 %v3619_v61, %v3185_v62  ;;  %v1148_v62 = vperm.slane %v3949_v7, 3 }
 0x3d4   :  { %1665 = vmatpush.bf16.msra.mxu1 %v3216_v4  ;;  %1679 = vmatpush.bf16.msra.mxu2 %v3220_v8  ;;  %v3175_v4 = vld [vmem:[#allocation4 + $0x220] sm:$0xf]  ;;  %v3112_v8 = vor.u32 %v3602_v1, %v3111_v63 }
 0x3d5   :  { %v3176_v11 = vor.u32 %v3618_v5, %v3175_v4  ;;  %v1147_v4 = vperm.slane %v3949_v7, 2 }
 0x3d7   :  { %1534 = vmatpush.bf16.msra.mxu3 %v3144_v9  ;;  %1548 = vmatpush.bf16.msrb.mxu0 %v3148_v13  ;;  %v3177_v9 = vld [vmem:[#allocation4 + $0x228] sm:$0xf0]  ;;  %v3600_v13 = vld [vmem:[#allocation4 + $0x194] sm:$0xf0] }
 0x3d8   :  { %1666 = vmatpush.bf16.msra.mxu1 %v3208_v19  ;;  %1680 = vmatpush.bf16.msra.mxu2 %v3212_v20  ;;  %v3180_v16 = vor.u32 %v3617_v6, %v3177_v9  ;;  %v3105_v19 = vld [vmem:[#allocation4 + $0x198] sm:$0xf0]  ;;  %v3167_v20 = vld [vmem:[#allocation4 + $0x210] sm:$0xf] }
 0x3d9   :  { %v3108_v33 = vor.u32 %v3599_v14, %v3105_v19 }
 0x3db   :  { %1535 = vmatpush.bf16.msra.mxu3 %v3136_v26  ;;  %1549 = vmatpush.bf16.msrb.mxu0 %v3140_v30  ;;  %v3615_v26 = vld [vmem:[#allocation4 + $0x214] sm:$0xf] }
 0x3dc   :  { %1667 = vmatpush.bf16.msra.mxu1 %v3200_v31  ;;  %1681 = vmatpush.bf16.msra.mxu2 %v3204_v34  ;;  %v3104_v31 = vor.u32 %v3600_v13, %v3103_v12  ;;  %v3168_v34 = vor.u32 %v3616_v22, %v3167_v20  ;;  %v3172_v39 = vor.u32 %v3615_v26, %v3169_v27 }
 0x3df   :  { %1536 = vmatpush.bf16.msra.mxu3 %v3128_v38  ;;  %1550 = vmatpush.bf16.msrb.mxu0 %v3132_v42  ;;  %v3614_v42 = vld [vmem:[#allocation4 + $0x204] sm:$0xf0] }
 0x3e0   :  { %1668 = vmatpush.bf16.msra.mxu1 %v3192_v43  ;;  %1682 = vmatpush.bf16.msra.mxu2 %v3196_v47  ;;  %v3160_v50 = vor.u32 %v3614_v42, %v3159_v41  ;;  %v3631_v41 = vld [vmem:[#allocation2 + $0x150] sm:$0xff] }
 0x3e3   :  { %1537 = vmatpush.bf16.msra.mxu3 %v3120_v55  ;;  %1551 = vmatpush.bf16.msrb.mxu0 %v3124_v59  ;;  %v3164_v55 = vor.u32 %v3613_v44, %v3161_v45  ;;  %v3638_v44 = vld [vmem:[#allocation2 + $0x188] sm:$0xff] }
 0x3e4   :  { %1669 = vmatpush.bf16.msra.mxu1 %v3184_v60  ;;  %1683 = vmatpush.bf16.msra.mxu2 %v3188_v0  ;;  %v3630_v45 = vld [vmem:[#allocation2 + $0x148] sm:$0xff] }
 0x3e7   :  { %1538 = vmatpush.bf16.msra.mxu3 %v3112_v8  ;;  %1552 = vmatpush.bf16.msrb.mxu0 %v3116_v10 }
 0x3e8   :  { %1670 = vmatpush.bf16.msra.mxu1 %v3176_v11  ;;  %1684 = vmatpush.bf16.msra.mxu2 %v3180_v16 }
 0x3eb   :  { %1539 = vmatpush.bf16.msra.mxu3 %v3104_v31  ;;  %1553 = vmatpush.bf16.msrb.mxu0 %v3108_v33  ;;  %v3635_v31 = vld [vmem:[#allocation2 + $0x170] sm:$0xff]  ;;  %v3634_v33 = vld [vmem:[#allocation2 + $0x168] sm:$0xff] }
 0x3ec   :  { %1671 = vmatpush.bf16.msra.mxu1 %v3168_v34  ;;  %1685 = vmatpush.bf16.msra.mxu2 %v3172_v39  ;;  %v3641_v34 = vld [vmem:[#allocation2 + $0x1a0] sm:$0xff] }
 0x3ef   :  { %1554 = vmatpush.bf16.msrb.mxu0 %v3100_v49  ;;  %v3629_v49 = vld [vmem:[#allocation2 + $0x140] sm:$0xff] }
 0x3f0   :  { %1672 = vmatpush.bf16.msra.mxu1 %v3160_v50  ;;  %1686 = vmatpush.bf16.msra.mxu2 %v3164_v55  ;;  %v3652_v55 = vld [vmem:[#allocation2 + $0x1f8] sm:$0xff] }
 0x42e   :  { %v3930_v53 = vpop.f32.mrf.mxu0 }
 0x42f   :  { %v3932_v17 = vpop.f32.mrf.mxu1 }
 0x434   :  { %v3934_v18 = vpop.f32.mrf.mxu3 }
 0x435   :  { %v3936_v21 = vpop.f32.mrf.mxu2 }
 0x436   :  { %v3938_v25 = vpop.f32.mrf.mxu0 }
 0x437   :  { %v3944_v52 = vpop.f32.mrf.mxu1 }
 0x43c   :  { %v3940_v46 = vpop.f32.mrf.mxu3 }
 0x43d   :  { %v3942_v48 = vpop.f32.mrf.mxu2 }
 0x43e   :  { %v1110_v54 = vpop.f32.mrf.mxu0 }
 0x43f   :  { %v1111_v32 = vadd.f32 %v1110_v54, %v3930_v53  ;;  %v3096_v53 = vor.u32 %v3598_v36, %v3095_v35  ;;  %v3633_v35 = vld [vmem:[#allocation2 + $0x160] sm:$0xff] }
 0x441   :  { %v1154_v47 = vadd.f32 %v1146_v28, %v1111_v32  ;;  %1540 = vmatpush.bf16.msra.mxu3 %v3096_v53  ;;  %v3642_v32 = vld [vmem:[#allocation2 + $0x1a8] sm:$0xff] }
 0x444   :  { %v1096_v15 = vpop.f32.mrf.mxu3 }
 0x445   :  { %v1097_v23 = vadd.f32 %v1096_v15, %v3934_v18  ;;  %v1138_v29 = vpop.f32.mrf.mxu2  ;;  %v1124_v18 = vpop.f32.mrf.mxu1 }
 0x446   :  { %v1112_v30 = vpop.f32.mrf.mxu0  ;;  %v1139_v61 = vadd.f32 %v1138_v29, %v3936_v21  ;;  %v1125_v3 = vadd.f32 %v1124_v18, %v3932_v17  ;;  %v3636_v29 = vld [vmem:[#allocation2 + $0x178] sm:$0xff] }
 0x447   :  { %v1113_v38 = vadd.f32 %v1112_v30, %v3938_v25  ;;  %v1153_v43 = vadd.f32 %v1145_v24, %v1097_v23  ;;  %v3643_v30 = vld [vmem:[#allocation2 + $0x1b0] sm:$0xff]  ;;  %v3640_v18 = vld [vmem:[#allocation2 + $0x198] sm:$0xff] }
 0x448   :  { %v1156_v6 = vadd.f32 %v1148_v62, %v1139_v61  ;;  %v1155_v12 = vadd.f32 %v1147_v4, %v1125_v3  ;;  %v1697_v61 = vld [vmem:[%s4025_s2 + $0xb] sm:$0x3] }
 0x449   :  { %v1158_v51 = vadd.f32 %v1146_v28, %v1113_v38  ;;  %3732 = vtanh.f32 %v1153_v43  ;;  %v3644_v28 = vld [vmem:[#allocation2 + $0x1b8] sm:$0xff] }
 0x44a   :  { %3734 = vtanh.f32 %v1154_v47  ;;  %v3632_v38 = vld [vmem:[#allocation2 + $0x158] sm:$0xff]  ;;  %v3637_v47 = vld [vmem:[#allocation2 + $0x180] sm:$0xff] }
 0x44b   :  { %3736 = vtanh.f32 %v1158_v51 }
 0x44c   :  { %v1098_v54 = vpop.f32.mrf.mxu3 }
 0x44d   :  { %v1099_v25 = vadd.f32 %v1098_v54, %v3940_v46  ;;  %v1140_v57 = vpop.f32.mrf.mxu2  ;;  %v1126_v58 = vpop.f32.mrf.mxu1 }
 0x44e   :  { %v1141_v60 = vadd.f32 %v1140_v57, %v3942_v48  ;;  %v1127_v46 = vadd.f32 %v1126_v58, %v3944_v52 }
 0x44f   :  { %v1157_v56 = vadd.f32 %v1145_v24, %v1099_v25  ;;  %v3733_v59 = vpop.eup %3732 }
 0x450   :  { %v3735_v63 = vpop.eup %3734  ;;  %v1160_v5 = vadd.f32 %v1148_v62, %v1141_v60  ;;  %v1159_v9 = vadd.f32 %v1147_v4, %v1127_v46  ;;  %v1699_v46 = vperm.slane %v1697_v61, 0 }
 0x451   :  { %3738 = vtanh.f32 %v1157_v56  ;;  %v3737_v0 = vpop.eup %3736  ;;  %v1169_v1 = vpack.c.bf16 %v3735_v63, %v3733_v59 }
 0x452   :  { %3740 = vtanh.f32 %v1160_v5 }
 0x453   :  { %v1207_v10 = vunpack.c.h.b16 %v1169_v1  ;;  %v1319_v11 = vunpack.c.l.b16 %v1169_v1  ;;  %3742 = vtanh.f32 %v1156_v6  ;;  %v1700_v1 = vperm.slane %v1697_v61, 1 }
 0x454   :  { %3744 = vtanh.f32 %v1159_v9 }
 0x455   :  { %3746 = vtanh.f32 %v1155_v12 }
 0x457   :  { %v3739_v2 = vpop.eup %3738 }
 0x458   :  { %v1171_v8 = vpack.c.bf16 %v3737_v0, %v3739_v2  ;;  %v3741_v17 = vpop.eup %3740 }
 0x459   :  { %v3743_v7 = vpop.eup %3742 }
 0x45a   :  { %v1208_v48 = vunpack.c.h.b16 %v1171_v8  ;;  %v1320_v21 = vunpack.c.l.b16 %v1171_v8  ;;  %v3745_v14 = vpop.eup %3744 }
 0x45b   :  { %v1172_v15 = vpack.c.bf16 %v3741_v17, %v3745_v14  ;;  %v3747_v16 = vpop.eup %3746 }
 0x45c   :  { %v1209_v13 = vpack.c.b16 %v1208_v48, %v1207_v10  ;;  %v1321_v52 = vpack.c.b16 %v1320_v21, %v1319_v11  ;;  %v1170_v19 = vpack.c.bf16 %v3743_v7, %v3747_v16 }
 0x45d   :  { %v1450_v20 = vunpack.c.l.b16 %v1172_v15  ;;  %v1582_v22 = vunpack.c.h.b16 %v1172_v15 }
 0x45e   :  { %1299 = vmatmul.bf16.vlgmr.msrb.gmra.mxu3 %v1209_v13  ;;  %1313 = vmatmul.bf16.vlgmr.msra.gmra.mxu0 %v1209_v13  ;;  %v1449_v23 = vunpack.c.l.b16 %v1170_v19  ;;  %v1581_v24 = vunpack.c.h.b16 %v1170_v19 }
 0x45f   :  { %1411 = vmatmul.bf16.vlgmr.msrb.gmra.mxu1 %v1321_v52  ;;  %1425 = vmatmul.bf16.vlgmr.msrb.gmra.mxu2 %v1321_v52 }
 0x460   :  { %v1451_v26 = vpack.c.b16 %v1450_v20, %v1449_v23  ;;  %v1583_v27 = vpack.c.b16 %v1582_v22, %v1581_v24  ;;  %1799 = vmatpush.bf16.msrb.mxu3 %v3644_v28  ;;  %1865 = vmatpush.bf16.msra.mxu0 %v3636_v29  ;;  %v3651_v28 = vld [vmem:[#allocation2 + $0x1f0] sm:$0xff]  ;;  %v3650_v29 = vld [vmem:[#allocation2 + $0x1e8] sm:$0xff] }
 0x461   :  { %1956 = vmatpush.bf16.msrb.mxu1 %v3652_v55  ;;  %v3654_v55 = vld [vmem:[#allocation2 + $0x208] sm:$0xff] }
 0x464   :  { %1800 = vmatpush.bf16.msrb.mxu3 %v3643_v30  ;;  %1866 = vmatpush.bf16.msra.mxu0 %v3635_v31  ;;  %v3649_v30 = vld [vmem:[#allocation2 + $0x1e0] sm:$0xff]  ;;  %v3648_v31 = vld [vmem:[#allocation2 + $0x1d8] sm:$0xff] }
 0x465   :  { %1957 = vmatpush.bf16.msrb.mxu1 %v3651_v28 }
 0x468   :  { %1801 = vmatpush.bf16.msrb.mxu3 %v3642_v32  ;;  %1867 = vmatpush.bf16.msra.mxu0 %v3634_v33  ;;  %v3647_v32 = vld [vmem:[#allocation2 + $0x1d0] sm:$0xff]  ;;  %v3646_v33 = vld [vmem:[#allocation2 + $0x1c8] sm:$0xff] }
 0x469   :  { %1958 = vmatpush.bf16.msrb.mxu1 %v3650_v29 }
 0x46c   :  { %1802 = vmatpush.bf16.msrb.mxu3 %v3641_v34  ;;  %1868 = vmatpush.bf16.msra.mxu0 %v3633_v35  ;;  %v3645_v34 = vld [vmem:[#allocation2 + $0x1c0] sm:$0xff]  ;;  %v3660_v35 = vld [vmem:[#allocation2 + $0x238] sm:$0xff] }
 0x46d   :  { %1959 = vmatpush.bf16.msrb.mxu1 %v3649_v30  ;;  %2041 = vmatpush.bf16.msrb.mxu2 %v3660_v35 }
 0x46e   :  { %1541 = vmatmul.bf16.vlgmr.msra.gmra.mxu3 %v1451_v26  ;;  %1555 = vmatmul.bf16.vlgmr.msrb.gmra.mxu0 %v1451_v26 }
 0x46f   :  { %1673 = vmatmul.bf16.vlgmr.msra.gmra.mxu1 %v1583_v27  ;;  %1687 = vmatmul.bf16.vlgmr.msra.gmra.mxu2 %v1583_v27 }
 0x470   :  { %1803 = vmatpush.bf16.msrb.mxu3 %v3640_v18  ;;  %1869 = vmatpush.bf16.msra.mxu0 %v3632_v38 }
 0x471   :  { %1960 = vmatpush.bf16.msrb.mxu1 %v3648_v31  ;;  %v3703_v31 = vld [vmem:[%s4025_s2 + $0x11] ss:$0 sm:$0xff] }
 0x474   :  { %1804 = vmatpush.bf16.msrb.mxu3 %v3639_v40  ;;  %1870 = vmatpush.bf16.msra.mxu0 %v3631_v41  ;;  %v3699_v40 = vld [vmem:[%s4025_s2 + $0xd] ss:$0 sm:$0xff] }
 0x475   :  { %1961 = vmatpush.bf16.msrb.mxu1 %v3647_v32  ;;  %v2231_v32 = vld [vmem:[%s4024_s1 + $0x8] sm:$0xff] }
 0x478   :  { %1805 = vmatpush.bf16.msrb.mxu3 %v3638_v44  ;;  %1871 = vmatpush.bf16.msra.mxu0 %v3630_v45 }
 0x479   :  { %1962 = vmatpush.bf16.msrb.mxu1 %v3646_v33 }
 0x47c   :  { %1806 = vmatpush.bf16.msrb.mxu3 %v3637_v47  ;;  %1872 = vmatpush.bf16.msra.mxu0 %v3629_v49 }
 0x47d   :  { %1963 = vmatpush.bf16.msrb.mxu1 %v3645_v34  ;;  %v2236_v34 = vsel %vm2234_vm0, %v2231_v32, 0 }
 0x4db   :  { %v1314_v36 = vpop.f32.mrf.mxu0 }
 0x4dc   :  { %v1412_v37 = vpop.f32.mrf.mxu1 }
 0x4e1   :  { %v1300_v39 = vpop.f32.mrf.mxu3 }
 0x4e2   :  { %v1426_v42 = vpop.f32.mrf.mxu2  ;;  %v1413_v25 = vadd.f32 %v1412_v37, %v1300_v39  ;;  %v3658_v37 = vld [vmem:[#allocation2 + $0x228] sm:$0xff] }
 0x4e3   :  { %v1316_v43 = vpop.f32.mrf.mxu0  ;;  %v1427_v58 = vadd.f32 %v1426_v42, %v1314_v36  ;;  %v3659_v36 = vld [vmem:[#allocation2 + $0x230] sm:$0xff] }
 0x4e4   :  { %v1414_v53 = vpop.f32.mrf.mxu1  ;;  %2042 = vmatpush.bf16.msrb.mxu2 %v3659_v36 }
 0x4e8   :  { %2043 = vmatpush.bf16.msrb.mxu2 %v3658_v37  ;;  %v2256_v37 = vand.u32 4294901760, %v2236_v34 }
 0x4e9   :  { %v1302_v50 = vpop.f32.mrf.mxu3 }
 0x4ea   :  { %v1428_v51 = vpop.f32.mrf.mxu2  ;;  %v1415_v4 = vadd.f32 %v1414_v53, %v1302_v50  ;;  %v3657_v50 = vld [vmem:[#allocation2 + $0x220] sm:$0xff] }
 0x4eb   :  { %v1556_v54 = vpop.f32.mrf.mxu0  ;;  %v1429_v3 = vadd.f32 %v1428_v51, %v1316_v43  ;;  %v3656_v51 = vld [vmem:[#allocation2 + $0x218] sm:$0xff] }
 0x4ec   :  { %v1674_v56 = vpop.f32.mrf.mxu1  ;;  %v1562_v62 = vadd.f32 %v1556_v54, %v1427_v58  ;;  %2044 = vmatpush.bf16.msrb.mxu2 %v3657_v50  ;;  %v3655_v54 = vld [vmem:[#allocation2 + $0x210] sm:$0xff]  ;;  %v3666_v58 = vld [vmem:[#allocation2 + $0x268] sm:$0xff] }
 0x4f0   :  { %2045 = vmatpush.bf16.msrb.mxu2 %v3656_v51 }
 0x4f1   :  { %v1542_v57 = vpop.f32.mrf.mxu3 }
 0x4f2   :  { %v1561_v59 = vadd.f32 %v1542_v57, %v1413_v25  ;;  %v1688_v60 = vpop.f32.mrf.mxu2  ;;  %v3653_v25 = vld [vmem:[#allocation2 + $0x200] sm:$0xff]  ;;  %v3667_v57 = vld [vmem:[#allocation2 + $0x270] sm:$0xff] }
 0x4f3   :  { %v1694_v0 = vadd.f32 %v1688_v60, %v1562_v62  ;;  %v1558_v2 = vpop.f32.mrf.mxu0  ;;  %v3700_v60 = vld [vmem:[%s4025_s2 + $0xe] ss:$0 sm:$0xff] }
 0x4f4   :  { %v1693_v63 = vadd.f32 %v1674_v56, %v1561_v59  ;;  %v1564_v6 = vadd.f32 %v1558_v2, %v1429_v3  ;;  %v1676_v11 = vpop.f32.mrf.mxu1  ;;  %2046 = vmatpush.bf16.msrb.mxu2 %v3655_v54  ;;  %v3668_v56 = vld [vmem:[#allocation2 + $0x278] sm:$0xff]  ;;  %v3665_v2 = vld [vmem:[#allocation2 + $0x260] sm:$0xff] }
 0x4f5   :  { %v1704_v9 = vadd.f32 %v1700_v1, %v1694_v0  ;;  %2126 = vmatpush.bf16.msra.mxu3 %v3668_v56  ;;  %v3664_v3 = vld [vmem:[#allocation2 + $0x258] sm:$0xff] }
 0x4f6   :  { %v1703_v5 = vadd.f32 %v1699_v46, %v1693_v63 }
 0x4f8   :  { %3748 = vtanh.f32 %v1703_v5  ;;  %2047 = vmatpush.bf16.msrb.mxu2 %v3654_v55  ;;  %v3662_v5 = vld [vmem:[#allocation2 + $0x248] sm:$0xff] }
 0x4f9   :  { %v1544_v8 = vpop.f32.mrf.mxu3  ;;  %3750 = vtanh.f32 %v1704_v9  ;;  %2127 = vmatpush.bf16.msra.mxu3 %v3667_v57  ;;  %v3675_v9 = vld [vmem:[#allocation2 + $0x2b0] sm:$0xff] }
 0x4fa   :  { %v1563_v10 = vadd.f32 %v1544_v8, %v1415_v4  ;;  %v1690_v48 = vpop.f32.mrf.mxu2  ;;  %v3663_v4 = vld [vmem:[#allocation2 + $0x250] sm:$0xff]  ;;  %v3676_v8 = vld [vmem:[#allocation2 + $0x2b8] sm:$0xff] }
 0x4fb   :  { %v1696_v21 = vadd.f32 %v1690_v48, %v1564_v6  ;;  %v3661_v6 = vld [vmem:[#allocation2 + $0x240] sm:$0xff]  ;;  %2211 = vmatpush.bf16.msrb.mxu0 %v3676_v8 }
 0x4fc   :  { %v1695_v12 = vadd.f32 %v1676_v11, %v1563_v10  ;;  %2048 = vmatpush.bf16.msrb.mxu2 %v3653_v25  ;;  %v3674_v10 = vld [vmem:[#allocation2 + $0x2a8] sm:$0xff] }
 0x4fd   :  { %v1706_v13 = vadd.f32 %v1700_v1, %v1696_v21  ;;  %2128 = vmatpush.bf16.msra.mxu3 %v3666_v58  ;;  %v3701_v11 = vld [vmem:[%s4025_s2 + $0xf] ss:$0 sm:$0xff] }
 0x4fe   :  { %v1705_v52 = vadd.f32 %v1699_v46, %v1695_v12  ;;  %v3749_v17 = vpop.eup %3748 }
 0x4ff   :  { %3752 = vtanh.f32 %v1706_v13  ;;  %v3751_v7 = vpop.eup %3750  ;;  %2212 = vmatpush.bf16.msrb.mxu0 %v3675_v9 }
 0x500   :  { %3754 = vtanh.f32 %v1705_v52  ;;  %v1711_v15 = vpack.c.bf16 %v3751_v7, %v3749_v17 }
 0x501   :  { %2129 = vmatpush.bf16.msra.mxu3 %v3665_v2  ;;  %v3679_v2 = vld [vmem:[%s4026_s3 + $0x10] sm:$0xff] }
 0x502   :  { %v1747_v20 = vunpack.c.h.b16 %v1711_v15  ;;  %v1813_v23 = vunpack.c.l.b16 %v1711_v15  ;;  %v3672_v15 = vld [vmem:[#allocation2 + $0x298] sm:$0xff] }
 0x503   :  { %2213 = vmatpush.bf16.msrb.mxu0 %v3674_v10 }
 0x505   :  { %v3753_v14 = vpop.eup %3752  ;;  %2130 = vmatpush.bf16.msra.mxu3 %v3664_v3  ;;  %v3678_v3 = vld [vmem:[%s4026_s3 + $0x8] sm:$0xff] }
 0x506   :  { %v3755_v16 = vpop.eup %3754 }
 0x507   :  { %v1712_v19 = vpack.c.bf16 %v3753_v14, %v3755_v16  ;;  %v3673_v14 = vld [vmem:[#allocation2 + $0x2a0] sm:$0xff]  ;;  %v3671_v16 = vld [vmem:[#allocation2 + $0x290] sm:$0xff] }
 0x508   :  { %2214 = vmatpush.bf16.msrb.mxu0 %v3673_v14 }
 0x509   :  { %v1748_v22 = vunpack.c.h.b16 %v1712_v19  ;;  %v1814_v24 = vunpack.c.l.b16 %v1712_v19  ;;  %2131 = vmatpush.bf16.msra.mxu3 %v3663_v4  ;;  %v3670_v19 = vld [vmem:[#allocation2 + $0x288] sm:$0xff]  ;;  %v3677_v4 = vld [vmem:[%s4026_s3] sm:$0xff] }
 0x50b   :  { %v1749_v26 = vpack.c.b16 %v1748_v22, %v1747_v20  ;;  %v1815_v27 = vpack.c.b16 %v1814_v24, %v1813_v23  ;;  %v3669_v20 = vld [vmem:[#allocation2 + $0x280] sm:$0xff]  ;;  %v3702_v23 = vld [vmem:[%s4025_s2 + $0x10] ss:$0 sm:$0xff] }
 0x50c   :  { %2215 = vmatpush.bf16.msrb.mxu0 %v3672_v15 }
 0x50d   :  { %1807 = vmatmul.bf16.vlgmr.msrb.gmra.mxu3 %v1749_v26  ;;  %1873 = vmatmul.bf16.vlgmr.msra.gmra.mxu0 %v1815_v27 }
 0x50e   :  { %2132 = vmatpush.bf16.msra.mxu3 %v3662_v5 }
 0x510   :  { %2216 = vmatpush.bf16.msrb.mxu0 %v3671_v16 }
 0x512   :  { %2133 = vmatpush.bf16.msra.mxu3 %v3661_v6 }
 0x514   :  { %2217 = vmatpush.bf16.msrb.mxu0 %v3670_v19 }
 0x518   :  { %2218 = vmatpush.bf16.msrb.mxu0 %v3669_v20 }
 0x58a   :  { %v1874_v18 = vpop.f32.mrf.mxu0 }
 0x590   :  { %v1808_v38 = vpop.f32.mrf.mxu3 }
 0x591   :  { %v1875_v39 = vadd.f32 %v1874_v18, %v1808_v38  ;;  %v2229_v18 = vld [vmem:[%s4024_s1] sm:$0xff] }
 0x592   :  { %v1876_v42 = vpop.f32.mrf.mxu0 }
 0x593   :  { %v1883_v41 = vadd.f32 %v3699_v40, %v1875_v39 }
 0x595   :  { %3756 = vtanh.f32 %v1883_v41 }
 0x598   :  { %v1810_v43 = vpop.f32.mrf.mxu3 }
 0x599   :  { %v1877_v44 = vadd.f32 %v1876_v42, %v1810_v43 }
 0x59b   :  { %v1884_v45 = vadd.f32 %v3699_v40, %v1877_v44  ;;  %v3757_v53 = vpop.eup %3756  ;;  %v2257_v40 = vsub.f32 %v2236_v34, %v2256_v37 }
 0x59d   :  { %3758 = vtanh.f32 %v1884_v45  ;;  %v2258_v45 = vand.u32 4294901760, %v2257_v40 }
 0x59f   :  { %v2259_v51 = vsub.f32 %v2257_v40, %v2258_v45 }
 0x5a1   :  { %v2260_v25 = vand.u32 4294901760, %v2259_v51 }
 0x5a3   :  { %v3759_v47 = vpop.eup %3758 }
 0x5a4   :  { %v1887_v49 = vpack.c.bf16 %v3759_v47, %v3757_v53  ;;  %v2230_v53 = vld [vmem:[%s4024_s1 + $0x10] sm:$0xff] }
 0x5a6   :  { %1964 = vmatmul.bf16.vlgmr.msrb.gmra.mxu1 %v1887_v49 }
 0x623   :  { %v1965_v59 = vpop.f32.mrf.mxu1 }
 0x624   :  { %v1966_v61 = vadd.f32 %v3700_v60, %v1965_v59 }
 0x626   :  { %3760 = vtanh.f32 %v1966_v61 }
 0x62b   :  { %v1967_v62 = vpop.f32.mrf.mxu1 }
 0x62c   :  { %v1968_v63 = vadd.f32 %v3700_v60, %v1967_v62  ;;  %v3761_v46 = vpop.eup %3760  ;;  %v3684_v62 = vld [vmem:[%s4026_s3 + $0x38] sm:$0xff] }
 0x62e   :  { %3762 = vtanh.f32 %v1968_v63  ;;  %v3683_v63 = vld [vmem:[%s4026_s3 + $0x30] sm:$0xff] }
 0x634   :  { %v3763_v0 = vpop.eup %3762 }
 0x635   :  { %v1972_v1 = vpack.c.bf16 %v3763_v0, %v3761_v46  ;;  %v3682_v46 = vld [vmem:[%s4026_s3 + $0x28] sm:$0xff]  ;;  %v3681_v0 = vld [vmem:[%s4026_s3 + $0x20] sm:$0xff] }
 0x637   :  { %2049 = vmatmul.bf16.vlgmr.msrb.gmra.mxu2 %v1972_v1  ;;  %v3680_v1 = vld [vmem:[%s4026_s3 + $0x18] sm:$0xff] }
 0x6ba   :  { %v2050_v48 = vpop.f32.mrf.mxu2 }
 0x6bb   :  { %v2051_v21 = vadd.f32 %v3701_v11, %v2050_v48 }
 0x6bd   :  { %3764 = vtanh.f32 %v2051_v21 }
 0x6c2   :  { %v2052_v12 = vpop.f32.mrf.mxu2 }
 0x6c3   :  { %v2053_v13 = vadd.f32 %v3701_v11, %v2052_v12  ;;  %v3765_v52 = vpop.eup %3764 }
 0x6c5   :  { %3766 = vtanh.f32 %v2053_v13 }
 0x6cb   :  { %v3767_v17 = vpop.eup %3766 }
 0x6cc   :  { %v2057_v7 = vpack.c.bf16 %v3767_v17, %v3765_v52  ;;  %v2397_v52 = vld [vmem:[%s4023_s0 + $0x8] sm:$0xff] }
 0x6ce   :  { %2134 = vmatmul.bf16.vlgmr.msra.gmra.mxu3 %v2057_v7 }
 0x751   :  { %v2135_v22 = vpop.f32.mrf.mxu3 }
 0x752   :  { %v2136_v24 = vadd.f32 %v3702_v23, %v2135_v22 }
 0x754   :  { %3768 = vtanh.f32 %v2136_v24 }
 0x759   :  { %v2137_v26 = vpop.f32.mrf.mxu3 }
 0x75a   :  { %v2138_v27 = vadd.f32 %v3702_v23, %v2137_v26  ;;  %v3769_v28 = vpop.eup %3768 }
 0x75c   :  { %3770 = vtanh.f32 %v2138_v27 }
 0x762   :  { %v3771_v29 = vpop.eup %3770 }
 0x763   :  { %v2142_v30 = vpack.c.bf16 %v3771_v29, %v3769_v28 }
 0x765   :  { %2219 = vmatmul.bf16.vlgmr.msrb.gmra.mxu0 %v2142_v30 }
 0x7e2   :  { %v2220_v33 = vpop.f32.mrf.mxu0 }
 0x7e3   :  { %v2221_v35 = vadd.f32 %v3703_v31, %v2220_v33 }
 0x7e5   :  { %v2225_v36 = vmul.f32 0.01, %v2221_v35 }
 0x7e7   :  { %v2227_v38 = vmax.f32 %v2221_v35, %v2225_v36 }
 0x7e9   :  { %v2232_v39 = vmul.f32 %v2229_v18, %v2227_v38 }
 0x7ea   :  { %v2222_v41 = vpop.f32.mrf.mxu0 }
 0x7eb   :  { %v2223_v42 = vadd.f32 %v3703_v31, %v2222_v41  ;;  %v2254_v43 = vand.u32 4294901760, %v2232_v39 }
 0x7ed   :  { %v2226_v44 = vmul.f32 0.01, %v2223_v42  ;;  %v2286_v49 = vsub.f32 %v2232_v39, %v2254_v43 }
 0x7ef   :  { %v2228_v47 = vmax.f32 %v2223_v42, %v2226_v44  ;;  %v2287_v56 = vand.u32 4294901760, %v2286_v49 }
 0x7f1   :  { %v2233_v50 = vmul.f32 %v2230_v53, %v2228_v47  ;;  %v2288_v59 = vsub.f32 %v2286_v49, %v2287_v56 }
 0x7f3   :  { %v2252_v54 = vand.u32 4294901760, %v2233_v50  ;;  %v2289_v61 = vand.u32 4294901760, %v2288_v59 }
 0x7f5   :  { %v2280_v55 = vsub.f32 %v2233_v50, %v2252_v54  ;;  %2253 = vmatpush.msra.mxu1 %v2252_v54 }
 0x7f7   :  { %2255 = vmatpush.msra.mxu1 %v2254_v43  ;;  %v2281_v57 = vand.u32 4294901760, %v2280_v55 }
 0x7f8   :  { %2261 = vmatmul.f32.vlgmr.msra.gmra.mxu1 %v2260_v25 }
 0x7f9   :  { %2337 = vmatpush.msrb.mxu1 %v2252_v54  ;;  %v2282_v58 = vsub.f32 %v2280_v55, %v2281_v57 }
 0x7fb   :  { %2339 = vmatpush.msrb.mxu1 %v2254_v43  ;;  %v2283_v60 = vand.u32 4294901760, %v2282_v58 }
 0x7fd   :  { %2364 = vmatpush.msra.mxu1 %v2281_v57  ;;  %2284 = vmatpush.msrb.mxu3 %v2283_v60 }
 0x7ff   :  { %2368 = vmatpush.msra.mxu1 %v2287_v56  ;;  %2290 = vmatpush.msrb.mxu3 %v2289_v61 }
 0x800   :  { %2292 = vmatmul.f32.vlgmr.msrb.gmra.mxu3 %v2256_v37  ;;  %2343 = vmatmul.f32.vlgmr.msrb.gmra.mxu1 %v2258_v45 }
 0x801   :  { %2312 = vmatpush.msra.mxu3 %v2280_v55  ;;  %2465 = vmatpush.bf16.msrb.mxu1 %v3684_v62 }
 0x803   :  { %2315 = vmatpush.msra.mxu3 %v2286_v49 }
 0x805   :  { %2389 = vmatpush.msrb.mxu3 %v2252_v54  ;;  %2466 = vmatpush.bf16.msrb.mxu1 %v3683_v63 }
 0x807   :  { %2391 = vmatpush.msrb.mxu3 %v2254_v43 }
 0x808   :  { %2318 = vmatmul.f32.vlgmr.msra.gmra.mxu3 %v2257_v40  ;;  %2370 = vmatmul.f32.vlgmr.msra.gmra.mxu1 %v2256_v37 }
 0x809   :  { %2467 = vmatpush.bf16.msrb.mxu1 %v3682_v46 }
 0x80d   :  { %2468 = vmatpush.bf16.msrb.mxu1 %v3681_v0 }
 0x810   :  { %2393 = vmatmul.f32.vlgmr.msrb.gmra.mxu3 %v2256_v37 }
 0x811   :  { %2469 = vmatpush.bf16.msrb.mxu1 %v3680_v1 }
 0x815   :  { %2470 = vmatpush.bf16.msrb.mxu1 %v3679_v2 }
 0x819   :  { %2471 = vmatpush.bf16.msrb.mxu1 %v3678_v3 }
 0x81d   :  { %2472 = vmatpush.bf16.msrb.mxu1 %v3677_v4 }
 0x875   :  { %v2262_v5 = vpop.f32.mrf.mxu1 }
 0x87d   :  { %v2344_v8 = vpop.f32.mrf.mxu1 }
 0x883   :  { %v2293_v6 = vpop.f32.mrf.mxu3 }
 0x884   :  { %v2294_v9 = vadd.f32 %v2293_v6, %v2262_v5 }
 0x885   :  { %v2371_v21 = vpop.f32.mrf.mxu1 }
 0x88b   :  { %v2319_v10 = vpop.f32.mrf.mxu3 }
 0x88c   :  { %v2320_v48 = vadd.f32 %v2319_v10, %v2294_v9 }
 0x88e   :  { %v2345_v11 = vadd.f32 %v2344_v8, %v2320_v48 }
 0x890   :  { %v2372_v12 = vadd.f32 %v2371_v21, %v2345_v11 }
 0x893   :  { %v2394_v13 = vpop.f32.mrf.mxu3 }
 0x894   :  { %v2395_v17 = vadd.f32 %v2394_v13, %v2372_v12 }
 0x896   :  { %v2398_v7 = vadd.f32 %v2397_v52, %v2395_v17 }
 0x898   :  { %2399 = vst [vmem:[%s4030_s7] sm:$0xff] %v2398_v7  ;;  %v2400_v14 = vpack.c.bf16 %v2398_v7, %v2398_v7 }
 0x89a   :  { %2473 = vmatmul.bf16.vlgmr.msrb.gmra.mxu1 %v2400_v14 }
 0x917   :  { %v2474_v15 = vpop.f32.mrf.mxu1 }
 0x918   :  { %2478 = vst [vmem:[%s4030_s7 + $0x8] sm:$0xff] %v2474_v15 }
 0x91f   :  { %v2476_v16 = vpop.f32.mrf.mxu1 }
 0x920   :  { %2483 = vsyncpa [#allocation3], 1 }
 0x921   :  { %2484 = vsyncpa [#allocation5], 1 }

</bundles_post_ra>
